<compile_context>
chip_gen: v7x
topology: tpu7x:2x2x1
jax: 0.10.0
libtpu: 0.0.40
codegen_flags: <defaults>
</compile_context>

<pallas_src>
import functools

import jax
import jax.numpy as jnp
from jax import lax
from jax.experimental import pallas as pl
from jax.experimental.pallas import tpu as pltpu


# ----------------------------- in-kernel helpers -----------------------------
def _layernorm(x, gamma, beta, eps=1e-5):
    mu = jnp.mean(x, axis=-1, keepdims=True)
    var = jnp.mean((x - mu) ** 2, axis=-1, keepdims=True)
    return (x - mu) * lax.rsqrt(var + eps) * gamma + beta


# -------------------- fused L-layer transformer (one call) -------------------
def transformer_kernel(x_ref,
                       wqkv_ref, bqkv_ref, wo_ref, bo_ref,
                       ln1_g_ref, ln1_b_ref, ln2_g_ref, ln2_b_ref,
                       fc_w_ref, fc_b_ref, pj_w_ref, pj_b_ref,
                       out_ref, *, num_heads):
    l = pl.program_id(1)

    # Seed the resident activation from the embeddings on the first layer.
    @pl.when(l == 0)
    def _():
        out_ref[...] = x_ref[...]

    x = out_ref[0]                          # (S, D) f32, resident across layers
    S, D = x.shape
    H = num_heads
    hd = D // H
    scale = 1.0 / float(hd) ** 0.5
    bf16 = jnp.bfloat16

    # ---- x = x + attn(ln_1(x)) with causal mask ----
    xn = _layernorm(x, ln1_g_ref[0], ln1_b_ref[0])
    # fused QKV projection: one MXU pass with N = 3D (bf16 operands, f32 acc)
    qkv = jnp.dot(xn.astype(bf16), wqkv_ref[0],
                  preferred_element_type=jnp.float32) + bqkv_ref[0]   # (S, 3D)

    row = lax.broadcasted_iota(jnp.int32, (S, S), 0)
    col = lax.broadcasted_iota(jnp.int32, (S, S), 1)
    causal = col <= row

    attn = jnp.zeros((S, D), jnp.float32)
    for h in range(H):                      # static; each head is fully consumed
        q_h = qkv[:, h * hd:(h + 1) * hd].astype(bf16)
        k_h = qkv[:, D + h * hd:D + (h + 1) * hd].astype(bf16)
        v_h = qkv[:, 2 * D + h * hd:2 * D + (h + 1) * hd].astype(bf16)

        s = jnp.dot(q_h, k_h.T, preferred_element_type=jnp.float32) * scale
        s = jnp.where(causal, s, -1e30)
        s = s - jnp.max(s, axis=-1, keepdims=True)
        e = jnp.exp(s)
        p = e * pl.reciprocal(jnp.sum(e, axis=-1, keepdims=True), approx=True)

        ctx = jnp.dot(p.astype(bf16), v_h, preferred_element_type=jnp.float32)
        # Fold this head's context through its rows of the out-projection and
        # accumulate -> equivalent to concat(heads) @ Wo, with no concatenate.
        attn = attn + jnp.dot(ctx.astype(bf16), wo_ref[0, h],
                              preferred_element_type=jnp.float32)
    x = x + attn + bo_ref[0]

    # ---- x = x + mlp(ln_2(x)), mlp = Linear -> QuickGELU -> Linear ----
    xn2 = _layernorm(x, ln2_g_ref[0], ln2_b_ref[0])
    hmid = jnp.dot(xn2.astype(bf16), fc_w_ref[0],
                   preferred_element_type=jnp.float32) + fc_b_ref[0]
    hmid = hmid * jax.nn.sigmoid(1.702 * hmid)          # QuickGELU (f32)
    mlp = jnp.dot(hmid.astype(bf16), pj_w_ref[0],
                  preferred_element_type=jnp.float32) + pj_b_ref[0]

    out_ref[0] = x + mlp


def run_transformer(x, p, num_heads):
    B, S, D = x.shape
    L = p["wqkv"].shape[0]
    F = p["fc_w"].shape[-1]
    hd = D // num_heads
    wo = p["wo"].reshape(L, num_heads, hd, D)           # head-major view (free)

    kern = functools.partial(transformer_kernel, num_heads=num_heads)
    return pl.pallas_call(
        kern,
        out_shape=jax.ShapeDtypeStruct((B, S, D), jnp.float32),
        grid_spec=pltpu.PrefetchScalarGridSpec(
            num_scalar_prefetch=0,
            grid=(B, L),                                # batch parallel, layers inner
            in_specs=[
                pl.BlockSpec((1, S, D), lambda b, l: (b, 0, 0)),          # x (resident)
                pl.BlockSpec((1, D, 3 * D), lambda b, l: (l, 0, 0)),      # W_qkv
                pl.BlockSpec((1, 1, 3 * D), lambda b, l: (l, 0, 0)),      # b_qkv
                pl.BlockSpec((1, num_heads, hd, D), lambda b, l: (l, 0, 0, 0)),  # W_o
                pl.BlockSpec((1, 1, D), lambda b, l: (l, 0, 0)),          # b_o
                pl.BlockSpec((1, 1, D), lambda b, l: (l, 0, 0)),          # ln1 gamma
                pl.BlockSpec((1, 1, D), lambda b, l: (l, 0, 0)),          # ln1 beta
                pl.BlockSpec((1, 1, D), lambda b, l: (l, 0, 0)),          # ln2 gamma
                pl.BlockSpec((1, 1, D), lambda b, l: (l, 0, 0)),          # ln2 beta
                pl.BlockSpec((1, D, F), lambda b, l: (l, 0, 0)),          # mlp fc W
                pl.BlockSpec((1, 1, F), lambda b, l: (l, 0, 0)),          # mlp fc b
                pl.BlockSpec((1, F, D), lambda b, l: (l, 0, 0)),          # mlp proj W
                pl.BlockSpec((1, 1, D), lambda b, l: (l, 0, 0)),          # mlp proj b
            ],
            out_specs=pl.BlockSpec((1, S, D), lambda b, l: (b, 0, 0)),    # resident
        ),
        compiler_params=pltpu.CompilerParams(
            dimension_semantics=("parallel", "arbitrary"),
            # above the 16/32 MiB scoped defaults, within every generation's
            # physical VMEM (v7x = 64 MiB); raise further on v6e for CLIP scale.
            vmem_limit_bytes=64 * 1024 * 1024,
        ),
    )(x, p["wqkv"], p["bqkv"], wo, p["bo"],
      p["ln1_g"], p["ln1_b"], p["ln2_g"], p["ln2_b"],
      p["fc_w"], p["fc_b"], p["pj_w"], p["pj_b"])


# --------------- ln_final + text_projection on gathered EOT rows -------------
def head_kernel(x_ref, g_ref, b_ref, w_ref, out_ref):
    xn = _layernorm(x_ref[...], g_ref[...], b_ref[...])
    out_ref[...] = jnp.dot(xn.astype(w_ref.dtype), w_ref[...],
                           preferred_element_type=jnp.float32)


def run_final(x_eot, lnf_g, lnf_b, text_proj):
    B, D = x_eot.shape
    P = text_proj.shape[1]
    return pl.pallas_call(
        head_kernel,
        out_shape=jax.ShapeDtypeStruct((B, P), jnp.float32),
        grid=(1,),
        in_specs=[
            pl.BlockSpec((B, D), lambda i: (0, 0)),
            pl.BlockSpec((1, D), lambda i: (0, 0)),
            pl.BlockSpec((1, D), lambda i: (0, 0)),
            pl.BlockSpec((D, P), lambda i: (0, 0)),
        ],
        out_specs=pl.BlockSpec((B, P), lambda i: (0, 0)),
        compiler_params=pltpu.CompilerParams(dimension_semantics=("parallel",)),
    )(x_eot, lnf_g, lnf_b, text_proj)


# ------------------------------- full encoder --------------------------------
def encode_text(text, params, num_heads):
    # glue: embedding gather + positional add (cheap, data-dependent, plain JAX)
    x = params["tok_emb"][text] + params["pos_emb"][None]        # (B, S, D) f32
    x = run_transformer(x, params, num_heads)
    # EOT pooling (EOT = highest token id, as in CLIP); gather in JAX so the
    # final kernel only sees (B, D) instead of DMA-ing the whole sequence.
    B = text.shape[0]
    eot_idx = jnp.argmax(text, axis=-1)
    x_eot = x[jnp.arange(B), eot_idx]                            # (B, D)
    return run_final(x_eot, params["lnf_g"], params["lnf_b"], params["text_proj"])


# --------------------------- deterministic params ----------------------------
def init_params(key, V, S, D, F, L, P):
    def nrm(k, shp, scale=0.02, dtype=jnp.float32):
        return (scale * jax.random.normal(k, shp)).astype(dtype)

    bf16 = jnp.bfloat16
    keys = iter(jax.random.split(key, 16))
    return {
        "tok_emb": nrm(next(keys), (V, D)),
        "pos_emb": nrm(next(keys), (S, D), 0.01),
        "lnf_g": jnp.ones((1, D), jnp.float32),
        "lnf_b": jnp.zeros((1, D), jnp.float32),
        "text_proj": nrm(next(keys), (D, P), dtype=bf16),
        # transformer stack, weights stacked along the layer axis.
        # Weights bf16 (halves HBM/VMEM traffic, native MXU rate on v6e/v7x);
        # biases and LayerNorm params stay f32.
        "wqkv": nrm(next(keys), (L, D, 3 * D), dtype=bf16),
        "bqkv": jnp.zeros((L, 1, 3 * D), jnp.float32),
        "wo":   nrm(next(keys), (L, D, D), dtype=bf16),
        "bo":   jnp.zeros((L, 1, D), jnp.float32),
        "ln1_g": jnp.ones((L, 1, D), jnp.float32),
        "ln1_b": jnp.zeros((L, 1, D), jnp.float32),
        "ln2_g": jnp.ones((L, 1, D), jnp.float32),
        "ln2_b": jnp.zeros((L, 1, D), jnp.float32),
        "fc_w": nrm(next(keys), (L, D, F), dtype=bf16),
        "fc_b": jnp.zeros((L, 1, F), jnp.float32),
        "pj_w": nrm(next(keys), (L, F, D), dtype=bf16),
        "pj_b": jnp.zeros((L, 1, D), jnp.float32),
    }


if __name__ == "__main__":
    V, B, S, D, H, L, P = 64, 2, 8, 32, 4, 2, 16
    F = 4 * D

    key = jax.random.PRNGKey(0)
    k_params, k_text = jax.random.split(key)
    params = init_params(k_params, V, S, D, F, L, P)

    text = jax.random.randint(k_text, (B, S), 1, V - 1)
    text = text.at[0, 4].set(V - 1)   # EOT token (highest id) for sequence 0
    text = text.at[1, 6].set(V - 1)   # EOT token for sequence 1

    out = encode_text(text, params, num_heads=H)
    out = jax.block_until_ready(out)
    assert out.shape == (B, P) and out.dtype == jnp.float32
    print("KERNEL_OK")
</pallas_src>

<mosaic_0001>
module attributes {stable_mosaic.version = 11 : i64} {
  func.func @transformer_kernel(%arg0: i32, %arg1: i32, %arg2: memref<1x8x32xf32, #tpu.memory_space<vmem>>, %arg3: memref<1x32x96xbf16, #tpu.memory_space<vmem>>, %arg4: memref<1x1x96xf32, #tpu.memory_space<vmem>>, %arg5: memref<1x4x8x32xbf16, #tpu.memory_space<vmem>>, %arg6: memref<1x1x32xf32, #tpu.memory_space<vmem>>, %arg7: memref<1x1x32xf32, #tpu.memory_space<vmem>>, %arg8: memref<1x1x32xf32, #tpu.memory_space<vmem>>, %arg9: memref<1x1x32xf32, #tpu.memory_space<vmem>>, %arg10: memref<1x1x32xf32, #tpu.memory_space<vmem>>, %arg11: memref<1x32x128xbf16, #tpu.memory_space<vmem>>, %arg12: memref<1x1x128xf32, #tpu.memory_space<vmem>>, %arg13: memref<1x128x32xbf16, #tpu.memory_space<vmem>>, %arg14: memref<1x1x32xf32, #tpu.memory_space<vmem>>, %arg15: memref<1x8x32xf32, #tpu.memory_space<vmem>>) attributes {dimension_semantics = [#tpu.dimension_semantics<parallel>, #tpu.dimension_semantics<arbitrary>], iteration_bounds = array<i64: 2, 2>, scalar_prefetch = 0 : i64, scratch_operands = 0 : i64, tpu.core_type = #tpu.core_type<tc>, window_params = [{transform_indices = @transform_0, window_bounds = array<i64: 1, 8, 32>}, {transform_indices = @transform_1, window_bounds = array<i64: 1, 32, 96>}, {transform_indices = @transform_2, window_bounds = array<i64: 1, 1, 96>}, {transform_indices = @transform_3, window_bounds = array<i64: 1, 4, 8, 32>}, {transform_indices = @transform_4, window_bounds = array<i64: 1, 1, 32>}, {transform_indices = @transform_5, window_bounds = array<i64: 1, 1, 32>}, {transform_indices = @transform_6, window_bounds = array<i64: 1, 1, 32>}, {transform_indices = @transform_7, window_bounds = array<i64: 1, 1, 32>}, {transform_indices = @transform_8, window_bounds = array<i64: 1, 1, 32>}, {transform_indices = @transform_9, window_bounds = array<i64: 1, 32, 128>}, {transform_indices = @transform_10, window_bounds = array<i64: 1, 1, 128>}, {transform_indices = @transform_11, window_bounds = array<i64: 1, 128, 32>}, {transform_indices = @transform_12, window_bounds = array<i64: 1, 1, 32>}, {transform_indices = @transform_13, window_bounds = array<i64: 1, 8, 32>}]} {
    %c0_i32 = arith.constant 0 : i32
    %0 = arith.cmpi eq, %arg1, %c0_i32 : i32
    %1 = arith.extui %0 : i1 to i32
    %c0_i32_0 = arith.constant 0 : i32
    %2 = arith.cmpi ne, %1, %c0_i32_0 : i32
    scf.if %2 {
      %c0_95 = arith.constant 0 : index
      %c0_96 = arith.constant 0 : index
      %c0_97 = arith.constant 0 : index
      %218 = vector.load %arg2[%c0_95, %c0_96, %c0_97] : memref<1x8x32xf32, #tpu.memory_space<vmem>>, vector<1x8x32xf32>
      %c0_98 = arith.constant 0 : index
      %c0_99 = arith.constant 0 : index
      %c0_100 = arith.constant 0 : index
      %219 = vector.load %arg15[%c0_98, %c0_99, %c0_100] : memref<1x8x32xf32, #tpu.memory_space<vmem>>, vector<1x8x32xf32>
      tpu.vector_store %arg15[%c0_98, %c0_99, %c0_100], %218 {strides = array<i32>} : memref<1x8x32xf32, #tpu.memory_space<vmem>>, vector<1x8x32xf32>,
    } else {
    }
    %c0 = arith.constant 0 : index
    %c0_1 = arith.constant 0 : index
    %c0_2 = arith.constant 0 : index
    %3 = vector.load %arg15[%c0, %c0_1, %c0_2] : memref<1x8x32xf32, #tpu.memory_space<vmem>>, vector<1x8x32xf32>
    %4 = vector.shape_cast %3 : vector<1x8x32xf32> to vector<8x32xf32>
    %c0_3 = arith.constant 0 : index
    %c0_4 = arith.constant 0 : index
    %c0_5 = arith.constant 0 : index
    %5 = vector.load %arg7[%c0_3, %c0_4, %c0_5] : memref<1x1x32xf32, #tpu.memory_space<vmem>>, vector<1x1x32xf32>
    %6 = vector.shape_cast %5 : vector<1x1x32xf32> to vector<1x32xf32>
    %c0_6 = arith.constant 0 : index
    %c0_7 = arith.constant 0 : index
    %c0_8 = arith.constant 0 : index
    %7 = vector.load %arg8[%c0_6, %c0_7, %c0_8] : memref<1x1x32xf32, #tpu.memory_space<vmem>>, vector<1x1x32xf32>
    %8 = vector.shape_cast %7 : vector<1x1x32xf32> to vector<1x32xf32>
    %cst = arith.constant dense<0.000000e+00> : vector<8xf32>
    %9 = vector.multi_reduction <add>, %4, %cst [1] : vector<8x32xf32> to vector<8xf32>
    %10 = vector.shape_cast %9 : vector<8xf32> to vector<8x1xf32>
    %cst_9 = arith.constant 3.200000e+01 : f32
    %11 = vector.broadcast %cst_9 : f32 to vector<8x1xf32>
    %12 = arith.divf %10, %11 : vector<8x1xf32>
    %13 = vector.broadcast %12 : vector<8x1xf32> to vector<8x32xf32>
    %14 = arith.subf %4, %13 : vector<8x32xf32>
    %15 = arith.mulf %14, %14 : vector<8x32xf32>
    %cst_10 = arith.constant dense<0.000000e+00> : vector<8xf32>
    %16 = vector.multi_reduction <add>, %15, %cst_10 [1] : vector<8x32xf32> to vector<8xf32>
    %17 = vector.shape_cast %16 : vector<8xf32> to vector<8x1xf32>
    %cst_11 = arith.constant 3.200000e+01 : f32
    %18 = vector.broadcast %cst_11 : f32 to vector<8x1xf32>
    %19 = arith.divf %17, %18 : vector<8x1xf32>
    %20 = vector.broadcast %12 : vector<8x1xf32> to vector<8x32xf32>
    %21 = arith.subf %4, %20 : vector<8x32xf32>
    %cst_12 = arith.constant 9.99999974E-6 : f32
    %22 = vector.broadcast %cst_12 : f32 to vector<8x1xf32>
    %23 = arith.addf %19, %22 : vector<8x1xf32>
    %24 = math.rsqrt %23 : vector<8x1xf32>
    %25 = vector.broadcast %24 : vector<8x1xf32> to vector<8x32xf32>
    %26 = arith.mulf %21, %25 : vector<8x32xf32>
    %27 = vector.broadcast %6 : vector<1x32xf32> to vector<8x32xf32>
    %28 = arith.mulf %26, %27 : vector<8x32xf32>
    %29 = vector.broadcast %8 : vector<1x32xf32> to vector<8x32xf32>
    %30 = arith.addf %28, %29 : vector<8x32xf32>
    %31 = arith.truncf %30 : vector<8x32xf32> to vector<8x32xbf16>
    %c0_13 = arith.constant 0 : index
    %c0_14 = arith.constant 0 : index
    %c0_15 = arith.constant 0 : index
    %32 = vector.load %arg3[%c0_13, %c0_14, %c0_15] : memref<1x32x96xbf16, #tpu.memory_space<vmem>>, vector<1x32x96xbf16>
    %33 = vector.shape_cast %32 : vector<1x32x96xbf16> to vector<32x96xbf16>
    %cst_16 = arith.constant dense<0.000000e+00> : vector<8x96xf32>
    %34 = tpu.matmul %31, %33, %cst_16 {dimension_numbers = #tpu.dot_dimension_numbers<[1], [0], [0], [1], [0, 0, 1, 1], [], []>} : vector<8x32xbf16>, vector<32x96xbf16>, vector<8x96xf32> -> vector<8x96xf32>
    %c0_17 = arith.constant 0 : index
    %c0_18 = arith.constant 0 : index
    %c0_19 = arith.constant 0 : index
    %35 = vector.load %arg4[%c0_17, %c0_18, %c0_19] : memref<1x1x96xf32, #tpu.memory_space<vmem>>, vector<1x1x96xf32>
    %36 = vector.shape_cast %35 : vector<1x1x96xf32> to vector<1x96xf32>
    %37 = vector.broadcast %36 : vector<1x96xf32> to vector<8x96xf32>
    %38 = arith.addf %34, %37 : vector<8x96xf32>
    %39 = tpu.iota {dimensions = array<i32: 0>} : vector<8x8xi32>
    %40 = tpu.iota {dimensions = array<i32: 1>} : vector<8x8xi32>
    %41 = arith.cmpi sle, %40, %39 : vector<8x8xi32>
    %cst_20 = arith.constant 0.000000e+00 : f32
    %42 = vector.broadcast %cst_20 : f32 to vector<8x32xf32>
    %43 = vector.extract_strided_slice %38 {offsets = [0, 0], sizes = [8, 8], strides = [1, 1]} : vector<8x96xf32> to vector<8x8xf32>
    %44 = arith.truncf %43 : vector<8x8xf32> to vector<8x8xbf16>
    %45 = vector.extract_strided_slice %38 {offsets = [0, 32], sizes = [8, 8], strides = [1, 1]} : vector<8x96xf32> to vector<8x8xf32>
    %46 = arith.truncf %45 : vector<8x8xf32> to vector<8x8xbf16>
    %47 = vector.extract_strided_slice %38 {offsets = [0, 64], sizes = [8, 8], strides = [1, 1]} : vector<8x96xf32> to vector<8x8xf32>
    %48 = arith.truncf %47 : vector<8x8xf32> to vector<8x8xbf16>
    %49 = tpu.transpose %46, [1, 0] : vector<8x8xbf16> -> vector<8x8xbf16>
    %cst_21 = arith.constant dense<0.000000e+00> : vector<8x8xf32>
    %50 = tpu.matmul %44, %49, %cst_21 {dimension_numbers = #tpu.dot_dimension_numbers<[1], [0], [0], [1], [0, 0, 1, 1], [], []>} : vector<8x8xbf16>, vector<8x8xbf16>, vector<8x8xf32> -> vector<8x8xf32>
    %cst_22 = arith.constant 0.353553385 : f32
    %51 = vector.broadcast %cst_22 : f32 to vector<8x8xf32>
    %52 = arith.mulf %50, %51 : vector<8x8xf32>
    %cst_23 = arith.constant -1.000000e+30 : f32
    %53 = vector.broadcast %cst_23 : f32 to vector<8x8xf32>
    %54 = arith.select %41, %52, %53 : vector<8x8xi1>, vector<8x8xf32>
    %cst_24 = arith.constant dense<0xFF800000> : vector<8xf32>
    %55 = vector.multi_reduction <maximumf>, %54, %cst_24 [1] : vector<8x8xf32> to vector<8xf32>
    %56 = vector.shape_cast %55 : vector<8xf32> to vector<8x1xf32>
    %57 = vector.broadcast %56 : vector<8x1xf32> to vector<8x8xf32>
    %58 = arith.subf %54, %57 : vector<8x8xf32>
    %59 = math.exp %58 : vector<8x8xf32>
    %cst_25 = arith.constant dense<0.000000e+00> : vector<8xf32>
    %60 = vector.multi_reduction <add>, %59, %cst_25 [1] : vector<8x8xf32> to vector<8xf32>
    %61 = vector.shape_cast %60 : vector<8xf32> to vector<8x1xf32>
    %62 = tpu.reciprocal %61 {approx = true} : vector<8x1xf32> -> vector<8x1xf32>
    %63 = vector.broadcast %62 : vector<8x1xf32> to vector<8x8xf32>
    %64 = arith.mulf %59, %63 : vector<8x8xf32>
    %65 = arith.truncf %64 : vector<8x8xf32> to vector<8x8xbf16>
    %cst_26 = arith.constant dense<0.000000e+00> : vector<8x8xf32>
    %66 = tpu.matmul %65, %48, %cst_26 {dimension_numbers = #tpu.dot_dimension_numbers<[1], [0], [0], [1], [0, 0, 1, 1], [], []>} : vector<8x8xbf16>, vector<8x8xbf16>, vector<8x8xf32> -> vector<8x8xf32>
    %67 = arith.truncf %66 : vector<8x8xf32> to vector<8x8xbf16>
    %c0_27 = arith.constant 0 : index
    %c0_28 = arith.constant 0 : index
    %c0_29 = arith.constant 0 : index
    %c0_30 = arith.constant 0 : index
    %68 = vector.load %arg5[%c0_27, %c0_28, %c0_29, %c0_30] : memref<1x4x8x32xbf16, #tpu.memory_space<vmem>>, vector<1x1x8x32xbf16>
    %69 = vector.shape_cast %68 : vector<1x1x8x32xbf16> to vector<8x32xbf16>
    %cst_31 = arith.constant dense<0.000000e+00> : vector<8x32xf32>
    %70 = tpu.matmul %67, %69, %cst_31 {dimension_numbers = #tpu.dot_dimension_numbers<[1], [0], [0], [1], [0, 0, 1, 1], [], []>} : vector<8x8xbf16>, vector<8x32xbf16>, vector<8x32xf32> -> vector<8x32xf32>
    %71 = arith.addf %42, %70 : vector<8x32xf32>
    %72 = vector.extract_strided_slice %38 {offsets = [0, 8], sizes = [8, 8], strides = [1, 1]} : vector<8x96xf32> to vector<8x8xf32>
    %73 = arith.truncf %72 : vector<8x8xf32> to vector<8x8xbf16>
    %74 = vector.extract_strided_slice %38 {offsets = [0, 40], sizes = [8, 8], strides = [1, 1]} : vector<8x96xf32> to vector<8x8xf32>
    %75 = arith.truncf %74 : vector<8x8xf32> to vector<8x8xbf16>
    %76 = vector.extract_strided_slice %38 {offsets = [0, 72], sizes = [8, 8], strides = [1, 1]} : vector<8x96xf32> to vector<8x8xf32>
    %77 = arith.truncf %76 : vector<8x8xf32> to vector<8x8xbf16>
    %78 = tpu.transpose %75, [1, 0] : vector<8x8xbf16> -> vector<8x8xbf16>
    %cst_32 = arith.constant dense<0.000000e+00> : vector<8x8xf32>
    %79 = tpu.matmul %73, %78, %cst_32 {dimension_numbers = #tpu.dot_dimension_numbers<[1], [0], [0], [1], [0, 0, 1, 1], [], []>} : vector<8x8xbf16>, vector<8x8xbf16>, vector<8x8xf32> -> vector<8x8xf32>
    %cst_33 = arith.constant 0.353553385 : f32
    %80 = vector.broadcast %cst_33 : f32 to vector<8x8xf32>
    %81 = arith.mulf %79, %80 : vector<8x8xf32>
    %cst_34 = arith.constant -1.000000e+30 : f32
    %82 = vector.broadcast %cst_34 : f32 to vector<8x8xf32>
    %83 = arith.select %41, %81, %82 : vector<8x8xi1>, vector<8x8xf32>
    %cst_35 = arith.constant dense<0xFF800000> : vector<8xf32>
    %84 = vector.multi_reduction <maximumf>, %83, %cst_35 [1] : vector<8x8xf32> to vector<8xf32>
    %85 = vector.shape_cast %84 : vector<8xf32> to vector<8x1xf32>
    %86 = vector.broadcast %85 : vector<8x1xf32> to vector<8x8xf32>
    %87 = arith.subf %83, %86 : vector<8x8xf32>
    %88 = math.exp %87 : vector<8x8xf32>
    %cst_36 = arith.constant dense<0.000000e+00> : vector<8xf32>
    %89 = vector.multi_reduction <add>, %88, %cst_36 [1] : vector<8x8xf32> to vector<8xf32>
    %90 = vector.shape_cast %89 : vector<8xf32> to vector<8x1xf32>
    %91 = tpu.reciprocal %90 {approx = true} : vector<8x1xf32> -> vector<8x1xf32>
    %92 = vector.broadcast %91 : vector<8x1xf32> to vector<8x8xf32>
    %93 = arith.mulf %88, %92 : vector<8x8xf32>
    %94 = arith.truncf %93 : vector<8x8xf32> to vector<8x8xbf16>
    %cst_37 = arith.constant dense<0.000000e+00> : vector<8x8xf32>
    %95 = tpu.matmul %94, %77, %cst_37 {dimension_numbers = #tpu.dot_dimension_numbers<[1], [0], [0], [1], [0, 0, 1, 1], [], []>} : vector<8x8xbf16>, vector<8x8xbf16>, vector<8x8xf32> -> vector<8x8xf32>
    %96 = arith.truncf %95 : vector<8x8xf32> to vector<8x8xbf16>
    %c0_38 = arith.constant 0 : index
    %c1 = arith.constant 1 : index
    %c0_39 = arith.constant 0 : index
    %c0_40 = arith.constant 0 : index
    %97 = vector.load %arg5[%c0_38, %c1, %c0_39, %c0_40] : memref<1x4x8x32xbf16, #tpu.memory_space<vmem>>, vector<1x1x8x32xbf16>
    %98 = vector.shape_cast %97 : vector<1x1x8x32xbf16> to vector<8x32xbf16>
    %cst_41 = arith.constant dense<0.000000e+00> : vector<8x32xf32>
    %99 = tpu.matmul %96, %98, %cst_41 {dimension_numbers = #tpu.dot_dimension_numbers<[1], [0], [0], [1], [0, 0, 1, 1], [], []>} : vector<8x8xbf16>, vector<8x32xbf16>, vector<8x32xf32> -> vector<8x32xf32>
    %100 = arith.addf %71, %99 : vector<8x32xf32>
    %101 = vector.extract_strided_slice %38 {offsets = [0, 16], sizes = [8, 8], strides = [1, 1]} : vector<8x96xf32> to vector<8x8xf32>
    %102 = arith.truncf %101 : vector<8x8xf32> to vector<8x8xbf16>
    %103 = vector.extract_strided_slice %38 {offsets = [0, 48], sizes = [8, 8], strides = [1, 1]} : vector<8x96xf32> to vector<8x8xf32>
    %104 = arith.truncf %103 : vector<8x8xf32> to vector<8x8xbf16>
    %105 = vector.extract_strided_slice %38 {offsets = [0, 80], sizes = [8, 8], strides = [1, 1]} : vector<8x96xf32> to vector<8x8xf32>
    %106 = arith.truncf %105 : vector<8x8xf32> to vector<8x8xbf16>
    %107 = tpu.transpose %104, [1, 0] : vector<8x8xbf16> -> vector<8x8xbf16>
    %cst_42 = arith.constant dense<0.000000e+00> : vector<8x8xf32>
    %108 = tpu.matmul %102, %107, %cst_42 {dimension_numbers = #tpu.dot_dimension_numbers<[1], [0], [0], [1], [0, 0, 1, 1], [], []>} : vector<8x8xbf16>, vector<8x8xbf16>, vector<8x8xf32> -> vector<8x8xf32>
    %cst_43 = arith.constant 0.353553385 : f32
    %109 = vector.broadcast %cst_43 : f32 to vector<8x8xf32>
    %110 = arith.mulf %108, %109 : vector<8x8xf32>
    %cst_44 = arith.constant -1.000000e+30 : f32
    %111 = vector.broadcast %cst_44 : f32 to vector<8x8xf32>
    %112 = arith.select %41, %110, %111 : vector<8x8xi1>, vector<8x8xf32>
    %cst_45 = arith.constant dense<0xFF800000> : vector<8xf32>
    %113 = vector.multi_reduction <maximumf>, %112, %cst_45 [1] : vector<8x8xf32> to vector<8xf32>
    %114 = vector.shape_cast %113 : vector<8xf32> to vector<8x1xf32>
    %115 = vector.broadcast %114 : vector<8x1xf32> to vector<8x8xf32>
    %116 = arith.subf %112, %115 : vector<8x8xf32>
    %117 = math.exp %116 : vector<8x8xf32>
    %cst_46 = arith.constant dense<0.000000e+00> : vector<8xf32>
    %118 = vector.multi_reduction <add>, %117, %cst_46 [1] : vector<8x8xf32> to vector<8xf32>
    %119 = vector.shape_cast %118 : vector<8xf32> to vector<8x1xf32>
    %120 = tpu.reciprocal %119 {approx = true} : vector<8x1xf32> -> vector<8x1xf32>
    %121 = vector.broadcast %120 : vector<8x1xf32> to vector<8x8xf32>
    %122 = arith.mulf %117, %121 : vector<8x8xf32>
    %123 = arith.truncf %122 : vector<8x8xf32> to vector<8x8xbf16>
    %cst_47 = arith.constant dense<0.000000e+00> : vector<8x8xf32>
    %124 = tpu.matmul %123, %106, %cst_47 {dimension_numbers = #tpu.dot_dimension_numbers<[1], [0], [0], [1], [0, 0, 1, 1], [], []>} : vector<8x8xbf16>, vector<8x8xbf16>, vector<8x8xf32> -> vector<8x8xf32>
    %125 = arith.truncf %124 : vector<8x8xf32> to vector<8x8xbf16>
    %c0_48 = arith.constant 0 : index
    %c2 = arith.constant 2 : index
    %c0_49 = arith.constant 0 : index
    %c0_50 = arith.constant 0 : index
    %126 = vector.load %arg5[%c0_48, %c2, %c0_49, %c0_50] : memref<1x4x8x32xbf16, #tpu.memory_space<vmem>>, vector<1x1x8x32xbf16>
    %127 = vector.shape_cast %126 : vector<1x1x8x32xbf16> to vector<8x32xbf16>
    %cst_51 = arith.constant dense<0.000000e+00> : vector<8x32xf32>
    %128 = tpu.matmul %125, %127, %cst_51 {dimension_numbers = #tpu.dot_dimension_numbers<[1], [0], [0], [1], [0, 0, 1, 1], [], []>} : vector<8x8xbf16>, vector<8x32xbf16>, vector<8x32xf32> -> vector<8x32xf32>
    %129 = arith.addf %100, %128 : vector<8x32xf32>
    %130 = vector.extract_strided_slice %38 {offsets = [0, 24], sizes = [8, 8], strides = [1, 1]} : vector<8x96xf32> to vector<8x8xf32>
    %131 = arith.truncf %130 : vector<8x8xf32> to vector<8x8xbf16>
    %132 = vector.extract_strided_slice %38 {offsets = [0, 56], sizes = [8, 8], strides = [1, 1]} : vector<8x96xf32> to vector<8x8xf32>
    %133 = arith.truncf %132 : vector<8x8xf32> to vector<8x8xbf16>
    %134 = vector.extract_strided_slice %38 {offsets = [0, 88], sizes = [8, 8], strides = [1, 1]} : vector<8x96xf32> to vector<8x8xf32>
    %135 = arith.truncf %134 : vector<8x8xf32> to vector<8x8xbf16>
    %136 = tpu.transpose %133, [1, 0] : vector<8x8xbf16> -> vector<8x8xbf16>
    %cst_52 = arith.constant dense<0.000000e+00> : vector<8x8xf32>
    %137 = tpu.matmul %131, %136, %cst_52 {dimension_numbers = #tpu.dot_dimension_numbers<[1], [0], [0], [1], [0, 0, 1, 1], [], []>} : vector<8x8xbf16>, vector<8x8xbf16>, vector<8x8xf32> -> vector<8x8xf32>
    %cst_53 = arith.constant 0.353553385 : f32
    %138 = vector.broadcast %cst_53 : f32 to vector<8x8xf32>
    %139 = arith.mulf %137, %138 : vector<8x8xf32>
    %cst_54 = arith.constant -1.000000e+30 : f32
    %140 = vector.broadcast %cst_54 : f32 to vector<8x8xf32>
    %141 = arith.select %41, %139, %140 : vector<8x8xi1>, vector<8x8xf32>
    %cst_55 = arith.constant dense<0xFF800000> : vector<8xf32>
    %142 = vector.multi_reduction <maximumf>, %141, %cst_55 [1] : vector<8x8xf32> to vector<8xf32>
    %143 = vector.shape_cast %142 : vector<8xf32> to vector<8x1xf32>
    %144 = vector.broadcast %143 : vector<8x1xf32> to vector<8x8xf32>
    %145 = arith.subf %141, %144 : vector<8x8xf32>
    %146 = math.exp %145 : vector<8x8xf32>
    %cst_56 = arith.constant dense<0.000000e+00> : vector<8xf32>
    %147 = vector.multi_reduction <add>, %146, %cst_56 [1] : vector<8x8xf32> to vector<8xf32>
    %148 = vector.shape_cast %147 : vector<8xf32> to vector<8x1xf32>
    %149 = tpu.reciprocal %148 {approx = true} : vector<8x1xf32> -> vector<8x1xf32>
    %150 = vector.broadcast %149 : vector<8x1xf32> to vector<8x8xf32>
    %151 = arith.mulf %146, %150 : vector<8x8xf32>
    %152 = arith.truncf %151 : vector<8x8xf32> to vector<8x8xbf16>
    %cst_57 = arith.constant dense<0.000000e+00> : vector<8x8xf32>
    %153 = tpu.matmul %152, %135, %cst_57 {dimension_numbers = #tpu.dot_dimension_numbers<[1], [0], [0], [1], [0, 0, 1, 1], [], []>} : vector<8x8xbf16>, vector<8x8xbf16>, vector<8x8xf32> -> vector<8x8xf32>
    %154 = arith.truncf %153 : vector<8x8xf32> to vector<8x8xbf16>
    %c0_58 = arith.constant 0 : index
    %c3 = arith.constant 3 : index
    %c0_59 = arith.constant 0 : index
    %c0_60 = arith.constant 0 : index
    %155 = vector.load %arg5[%c0_58, %c3, %c0_59, %c0_60] : memref<1x4x8x32xbf16, #tpu.memory_space<vmem>>, vector<1x1x8x32xbf16>
    %156 = vector.shape_cast %155 : vector<1x1x8x32xbf16> to vector<8x32xbf16>
    %cst_61 = arith.constant dense<0.000000e+00> : vector<8x32xf32>
    %157 = tpu.matmul %154, %156, %cst_61 {dimension_numbers = #tpu.dot_dimension_numbers<[1], [0], [0], [1], [0, 0, 1, 1], [], []>} : vector<8x8xbf16>, vector<8x32xbf16>, vector<8x32xf32> -> vector<8x32xf32>
    %158 = arith.addf %129, %157 : vector<8x32xf32>
    %159 = arith.addf %4, %158 : vector<8x32xf32>
    %c0_62 = arith.constant 0 : index
    %c0_63 = arith.constant 0 : index
    %c0_64 = arith.constant 0 : index
    %160 = vector.load %arg6[%c0_62, %c0_63, %c0_64] : memref<1x1x32xf32, #tpu.memory_space<vmem>>, vector<1x1x32xf32>
    %161 = vector.shape_cast %160 : vector<1x1x32xf32> to vector<1x32xf32>
    %162 = vector.broadcast %161 : vector<1x32xf32> to vector<8x32xf32>
    %163 = arith.addf %159, %162 : vector<8x32xf32>
    %c0_65 = arith.constant 0 : index
    %c0_66 = arith.constant 0 : index
    %c0_67 = arith.constant 0 : index
    %164 = vector.load %arg9[%c0_65, %c0_66, %c0_67] : memref<1x1x32xf32, #tpu.memory_space<vmem>>, vector<1x1x32xf32>
    %165 = vector.shape_cast %164 : vector<1x1x32xf32> to vector<1x32xf32>
    %c0_68 = arith.constant 0 : index
    %c0_69 = arith.constant 0 : index
    %c0_70 = arith.constant 0 : index
    %166 = vector.load %arg10[%c0_68, %c0_69, %c0_70] : memref<1x1x32xf32, #tpu.memory_space<vmem>>, vector<1x1x32xf32>
    %167 = vector.shape_cast %166 : vector<1x1x32xf32> to vector<1x32xf32>
    %cst_71 = arith.constant dense<0.000000e+00> : vector<8xf32>
    %168 = vector.multi_reduction <add>, %163, %cst_71 [1] : vector<8x32xf32> to vector<8xf32>
    %169 = vector.shape_cast %168 : vector<8xf32> to vector<8x1xf32>
    %cst_72 = arith.constant 3.200000e+01 : f32
    %170 = vector.broadcast %cst_72 : f32 to vector<8x1xf32>
    %171 = arith.divf %169, %170 : vector<8x1xf32>
    %172 = vector.broadcast %171 : vector<8x1xf32> to vector<8x32xf32>
    %173 = arith.subf %163, %172 : vector<8x32xf32>
    %174 = arith.mulf %173, %173 : vector<8x32xf32>
    %cst_73 = arith.constant dense<0.000000e+00> : vector<8xf32>
    %175 = vector.multi_reduction <add>, %174, %cst_73 [1] : vector<8x32xf32> to vector<8xf32>
    %176 = vector.shape_cast %175 : vector<8xf32> to vector<8x1xf32>
    %cst_74 = arith.constant 3.200000e+01 : f32
    %177 = vector.broadcast %cst_74 : f32 to vector<8x1xf32>
    %178 = arith.divf %176, %177 : vector<8x1xf32>
    %179 = vector.broadcast %171 : vector<8x1xf32> to vector<8x32xf32>
    %180 = arith.subf %163, %179 : vector<8x32xf32>
    %cst_75 = arith.constant 9.99999974E-6 : f32
    %181 = vector.broadcast %cst_75 : f32 to vector<8x1xf32>
    %182 = arith.addf %178, %181 : vector<8x1xf32>
    %183 = math.rsqrt %182 : vector<8x1xf32>
    %184 = vector.broadcast %183 : vector<8x1xf32> to vector<8x32xf32>
    %185 = arith.mulf %180, %184 : vector<8x32xf32>
    %186 = vector.broadcast %165 : vector<1x32xf32> to vector<8x32xf32>
    %187 = arith.mulf %185, %186 : vector<8x32xf32>
    %188 = vector.broadcast %167 : vector<1x32xf32> to vector<8x32xf32>
    %189 = arith.addf %187, %188 : vector<8x32xf32>
    %190 = arith.truncf %189 : vector<8x32xf32> to vector<8x32xbf16>
    %c0_76 = arith.constant 0 : index
    %c0_77 = arith.constant 0 : index
    %c0_78 = arith.constant 0 : index
    %191 = vector.load %arg11[%c0_76, %c0_77, %c0_78] : memref<1x32x128xbf16, #tpu.memory_space<vmem>>, vector<1x32x128xbf16>
    %192 = vector.shape_cast %191 : vector<1x32x128xbf16> to vector<32x128xbf16>
    %cst_79 = arith.constant dense<0.000000e+00> : vector<8x128xf32>
    %193 = tpu.matmul %190, %192, %cst_79 {dimension_numbers = #tpu.dot_dimension_numbers<[1], [0], [0], [1], [0, 0, 1, 1], [], []>} : vector<8x32xbf16>, vector<32x128xbf16>, vector<8x128xf32> -> vector<8x128xf32>
    %c0_80 = arith.constant 0 : index
    %c0_81 = arith.constant 0 : index
    %c0_82 = arith.constant 0 : index
    %194 = vector.load %arg12[%c0_80, %c0_81, %c0_82] : memref<1x1x128xf32, #tpu.memory_space<vmem>>, vector<1x1x128xf32>
    %195 = vector.shape_cast %194 : vector<1x1x128xf32> to vector<1x128xf32>
    %196 = vector.broadcast %195 : vector<1x128xf32> to vector<8x128xf32>
    %197 = arith.addf %193, %196 : vector<8x128xf32>
    %cst_83 = arith.constant 1.702000e+00 : f32
    %198 = vector.broadcast %cst_83 : f32 to vector<8x128xf32>
    %199 = arith.mulf %198, %197 : vector<8x128xf32>
    %200 = arith.negf %199 : vector<8x128xf32>
    %201 = math.exp %200 : vector<8x128xf32>
    %cst_84 = arith.constant 1.000000e+00 : f32
    %202 = vector.broadcast %cst_84 : f32 to vector<8x128xf32>
    %203 = arith.addf %202, %201 : vector<8x128xf32>
    %204 = arith.divf %202, %203 : vector<8x128xf32>
    %205 = arith.mulf %197, %204 : vector<8x128xf32>
    %206 = arith.truncf %205 : vector<8x128xf32> to vector<8x128xbf16>
    %c0_85 = arith.constant 0 : index
    %c0_86 = arith.constant 0 : index
    %c0_87 = arith.constant 0 : index
    %207 = vector.load %arg13[%c0_85, %c0_86, %c0_87] : memref<1x128x32xbf16, #tpu.memory_space<vmem>>, vector<1x128x32xbf16>
    %208 = vector.shape_cast %207 : vector<1x128x32xbf16> to vector<128x32xbf16>
    %cst_88 = arith.constant dense<0.000000e+00> : vector<8x32xf32>
    %209 = tpu.matmul %206, %208, %cst_88 {dimension_numbers = #tpu.dot_dimension_numbers<[1], [0], [0], [1], [0, 0, 1, 1], [], []>} : vector<8x128xbf16>, vector<128x32xbf16>, vector<8x32xf32> -> vector<8x32xf32>
    %c0_89 = arith.constant 0 : index
    %c0_90 = arith.constant 0 : index
    %c0_91 = arith.constant 0 : index
    %210 = vector.load %arg14[%c0_89, %c0_90, %c0_91] : memref<1x1x32xf32, #tpu.memory_space<vmem>>, vector<1x1x32xf32>
    %211 = vector.shape_cast %210 : vector<1x1x32xf32> to vector<1x32xf32>
    %212 = vector.broadcast %211 : vector<1x32xf32> to vector<8x32xf32>
    %213 = arith.addf %209, %212 : vector<8x32xf32>
    %214 = arith.addf %163, %213 : vector<8x32xf32>
    %c0_92 = arith.constant 0 : index
    %c0_93 = arith.constant 0 : index
    %c0_94 = arith.constant 0 : index
    %215 = vector.load %arg15[%c0_92, %c0_93, %c0_94] : memref<1x8x32xf32, #tpu.memory_space<vmem>>, vector<1x8x32xf32>
    %216 = vector.shape_cast %215 : vector<1x8x32xf32> to vector<8x32xf32>
    %217 = vector.shape_cast %214 : vector<8x32xf32> to vector<1x8x32xf32>
    tpu.vector_store %arg15[%c0_92, %c0_93, %c0_94], %217 {strides = array<i32>} : memref<1x8x32xf32, #tpu.memory_space<vmem>>, vector<1x8x32xf32>,
    return
  }
  func.func @transform_0(%arg0: i32, %arg1: i32) -> (i32, i32, i32) {
    %c0_i32 = arith.constant 0 : i32
    %c0_i32_0 = arith.constant 0 : i32
    %c0_i32_1 = arith.constant 0 : i32
    return %arg0, %c0_i32, %c0_i32_0 : i32, i32, i32
  }
  func.func @transform_1(%arg0: i32, %arg1: i32) -> (i32, i32, i32) {
    %c0_i32 = arith.constant 0 : i32
    %c0_i32_0 = arith.constant 0 : i32
    %c0_i32_1 = arith.constant 0 : i32
    return %arg1, %c0_i32, %c0_i32_0 : i32, i32, i32
  }
  func.func @transform_2(%arg0: i32, %arg1: i32) -> (i32, i32, i32) {
    %c0_i32 = arith.constant 0 : i32
    %c0_i32_0 = arith.constant 0 : i32
    %c0_i32_1 = arith.constant 0 : i32
    return %arg1, %c0_i32, %c0_i32_0 : i32, i32, i32
  }
  func.func @transform_3(%arg0: i32, %arg1: i32) -> (i32, i32, i32, i32) {
    %c0_i32 = arith.constant 0 : i32
    %c0_i32_0 = arith.constant 0 : i32
    %c0_i32_1 = arith.constant 0 : i32
    %c0_i32_2 = arith.constant 0 : i32
    return %arg1, %c0_i32, %c0_i32_0, %c0_i32_1 : i32, i32, i32, i32
  }
  func.func @transform_4(%arg0: i32, %arg1: i32) -> (i32, i32, i32) {
    %c0_i32 = arith.constant 0 : i32
    %c0_i32_0 = arith.constant 0 : i32
    %c0_i32_1 = arith.constant 0 : i32
    return %arg1, %c0_i32, %c0_i32_0 : i32, i32, i32
  }
  func.func @transform_5(%arg0: i32, %arg1: i32) -> (i32, i32, i32) {
    %c0_i32 = arith.constant 0 : i32
    %c0_i32_0 = arith.constant 0 : i32
    %c0_i32_1 = arith.constant 0 : i32
    return %arg1, %c0_i32, %c0_i32_0 : i32, i32, i32
  }
  func.func @transform_6(%arg0: i32, %arg1: i32) -> (i32, i32, i32) {
    %c0_i32 = arith.constant 0 : i32
    %c0_i32_0 = arith.constant 0 : i32
    %c0_i32_1 = arith.constant 0 : i32
    return %arg1, %c0_i32, %c0_i32_0 : i32, i32, i32
  }
  func.func @transform_7(%arg0: i32, %arg1: i32) -> (i32, i32, i32) {
    %c0_i32 = arith.constant 0 : i32
    %c0_i32_0 = arith.constant 0 : i32
    %c0_i32_1 = arith.constant 0 : i32
    return %arg1, %c0_i32, %c0_i32_0 : i32, i32, i32
  }
  func.func @transform_8(%arg0: i32, %arg1: i32) -> (i32, i32, i32) {
    %c0_i32 = arith.constant 0 : i32
    %c0_i32_0 = arith.constant 0 : i32
    %c0_i32_1 = arith.constant 0 : i32
    return %arg1, %c0_i32, %c0_i32_0 : i32, i32, i32
  }
  func.func @transform_9(%arg0: i32, %arg1: i32) -> (i32, i32, i32) {
    %c0_i32 = arith.constant 0 : i32
    %c0_i32_0 = arith.constant 0 : i32
    %c0_i32_1 = arith.constant 0 : i32
    return %arg1, %c0_i32, %c0_i32_0 : i32, i32, i32
  }
  func.func @transform_10(%arg0: i32, %arg1: i32) -> (i32, i32, i32) {
    %c0_i32 = arith.constant 0 : i32
    %c0_i32_0 = arith.constant 0 : i32
    %c0_i32_1 = arith.constant 0 : i32
    return %arg1, %c0_i32, %c0_i32_0 : i32, i32, i32
  }
  func.func @transform_11(%arg0: i32, %arg1: i32) -> (i32, i32, i32) {
    %c0_i32 = arith.constant 0 : i32
    %c0_i32_0 = arith.constant 0 : i32
    %c0_i32_1 = arith.constant 0 : i32
    return %arg1, %c0_i32, %c0_i32_0 : i32, i32, i32
  }
  func.func @transform_12(%arg0: i32, %arg1: i32) -> (i32, i32, i32) {
    %c0_i32 = arith.constant 0 : i32
    %c0_i32_0 = arith.constant 0 : i32
    %c0_i32_1 = arith.constant 0 : i32
    return %arg1, %c0_i32, %c0_i32_0 : i32, i32, i32
  }
  func.func @transform_13(%arg0: i32, %arg1: i32) -> (i32, i32, i32) {
    %c0_i32 = arith.constant 0 : i32
    %c0_i32_0 = arith.constant 0 : i32
    %c0_i32_1 = arith.constant 0 : i32
    return %arg0, %c0_i32, %c0_i32_0 : i32, i32, i32
  }
}

</mosaic_0001>

<bundles_post_ra>
// kernel: tpu_custom_call.1
= control target key start
LH: loop header
LB: loop body
LE: loop exit
PB: predicated region body
PF: predicated region fallthrough
CT: control target
= control target key end

     0   :  { %s4158_s0 = inlined_call_operand.hbm [shape: f32[2,8,32], index: 0, kind: input, shape index: {}]   ;;  %s4159_s1 = inlined_call_operand.hbm [shape: bf16[2,32,96], index: 1, kind: input, shape index: {}]   ;;  %s4160_s2 = inlined_call_operand.hbm [shape: f32[2,1,96], index: 2, kind: input, shape index: {}]   ;;  %s4161_s3 = inlined_call_operand.hbm [shape: bf16[2,4,8,32], index: 3, kind: input, shape index: {}]   ;;  %s4162_s4 = inlined_call_operand.hbm [shape: f32[2,1,32], index: 4, kind: input, shape index: {}]   ;;  %s4163_s5 = inlined_call_operand.hbm [shape: f32[2,1,32], index: 5, kind: input, shape index: {}]   ;;  %s4164_s6 = inlined_call_operand.hbm [shape: f32[2,1,32], index: 6, kind: input, shape index: {}]   ;;  %s4165_s7 = inlined_call_operand.hbm [shape: f32[2,1,32], index: 7, kind: input, shape index: {}]   ;;  %s4166_s8 = inlined_call_operand.hbm [shape: f32[2,1,32], index: 8, kind: input, shape index: {}]   ;;  %s4167_s9 = inlined_call_operand.hbm [shape: bf16[2,32,128], index: 9, kind: input, shape index: {}]   ;;  %s4168_s10 = inlined_call_operand.hbm [shape: f32[2,1,128], index: 10, kind: input, shape index: {}]   ;;  %s4169_s11 = inlined_call_operand.hbm [shape: bf16[2,128,32], index: 11, kind: input, shape index: {}]   ;;  %s4170_s12 = inlined_call_operand.hbm [shape: f32[2,1,32], index: 12, kind: input, shape index: {}]   ;;  %s4171_s13 = inlined_call_operand.hbm [shape: f32[2,8,32], index: 13, kind: output, shape index: {}]  }
   0x1   :  { %4207 = sst [smem:[#allocation45_spill]] %s4158_s0 }
   0x2   :  { %4208 = sst [smem:[#allocation46_spill]] %s4159_s1 }
   0x3   :  { %4209 = sst [smem:[#allocation47_spill]] %s4160_s2 }
   0x4   :  { %4210 = sst [smem:[#allocation48_spill]] %s4161_s3 }
   0x5   :  { %4211 = sst [smem:[#allocation49_spill]] %s4162_s4 }
   0x6   :  { %4212 = sst [smem:[#allocation50_spill]] %s4163_s5 }
   0x7   :  { %4213 = sst [smem:[#allocation51_spill]] %s4164_s6 }
   0x8   :  { %4214 = sst [smem:[#allocation52_spill]] %s4165_s7 }
   0x9   :  { %4215 = sst [smem:[#allocation53_spill]] %s4166_s8 }
   0xa   :  { %4216 = sst [smem:[#allocation54_spill]] %s4167_s9 }
   0xb   :  { %4217 = sst [smem:[#allocation55_spill]] %s4168_s10 }
   0xc   :  { %4218 = sst [smem:[#allocation56_spill]] %s4169_s11 }
   0xd   :  { %4219 = sst [smem:[#allocation57_spill]] %s4170_s12 }
   0xe   :  { %4220 = sst [smem:[#allocation58_spill]] %s4171_s13 }
   0xf   :  { %18 = vsyncpa [#allocation3], 0 }
  0x10   :  { %20 = vsyncpa [#allocation3 + $0x1], 0 }
  0x11   :  { %21 = vsyncpa [#allocation6], 0 }
  0x12   :  { %23 = vsyncpa [#allocation6 + $0x1], 0 }
  0x13   :  { %24 = vsyncpa [#allocation9], 0 }
  0x14   :  { %26 = vsyncpa [#allocation9 + $0x1], 0 }
  0x15   :  { %27 = vsyncpa [#allocation12], 0 }
  0x16   :  { %29 = vsyncpa [#allocation12 + $0x1], 0 }
  0x17   :  { %30 = vsyncpa [#allocation15], 0 }
  0x18   :  { %32 = vsyncpa [#allocation15 + $0x1], 0 }
  0x19   :  { %33 = vsyncpa [#allocation18], 0 }
  0x1a   :  { %35 = vsyncpa [#allocation18 + $0x1], 0 }
  0x1b   :  { %36 = vsyncpa [#allocation21], 0 }
  0x1c   :  { %38 = vsyncpa [#allocation21 + $0x1], 0 }
  0x1d   :  { %39 = vsyncpa [#allocation4], 0 }
  0x1e   :  { %41 = vsyncpa [#allocation4 + $0x1], 0  ;;  %s3274_s25 = smov 0   ;;  %s3276_s26 = smov 0  }
  0x1f   :  { %s3278_s27 = smov 0   ;;  %s3280_s28 = smov 0  }
  0x20   :  { %s3282_s29 = smov 0   ;;  %s3284_s30 = smov 0  }
  0x21   :  { %s3286_s14 = smov 0   ;;  %s3288_s15 = smov 0  }
  0x22   :  { %s3290_s16 = smov 0   ;;  %s3292_s17 = smov 0  }
  0x23   :  { %s3294_s18 = smov 0  }
  0x24 LB: > { %4221 = sst [smem:[#allocation32_spill]] %s3133_s25  ;;  %p4180_p0 = scmp.eq.s32.totalorder %s3173_s18, 0  ;;  %s3173_s18 = sphi %s3294_s18, %s47_s18   ;;  %s3169_s17 = sphi %s3292_s17, %s4298_s17   ;;  %s3165_s16 = sphi %s3290_s16, %s4297_s16   ;;  %s3161_s15 = sphi %s3288_s15, %s4296_s15   ;;  %s3157_s14 = sphi %s3286_s14, %s4295_s14   ;;  %s3153_s30 = sphi %s3284_s30, %s4294_s30   ;;  %s3149_s29 = sphi %s3282_s29, %s4300_s29   ;;  %s3145_s28 = sphi %s3280_s28, %s4299_s28   ;;  %s3141_s27 = sphi %s3278_s27, %s4292_s27   ;;  %s3137_s26 = sphi %s3276_s26, %s4291_s26   ;;  %s3133_s25 = sphi %s3274_s25, %s4290_s25  }
  0x25   : > { %4222 = sst [smem:[#allocation33_spill]] %s3137_s26  ;;  %p99_p1 = scmp.ne.s32.totalorder %s3141_s27, %s3137_s26 }
  0x26   : > { %4223 = sst [smem:[#allocation34_spill]] %s3141_s27  ;;  %p4179_p2 = scmp.lt.s32.totalorder %s3173_s18, 4 }
  0x27   : > { %4224 = sst [smem:[#allocation35_spill]] %s3153_s30  ;;  %p101_p3 = por %p99_p1, %p4180_p0 }
  0x28   : > { %4225 = sst [smem:[#allocation36_spill]] %s3157_s14  ;;  %s3336_s19 = sand.u32 1, %s3173_s18  }
  0x29   : > { %4226 = sst [smem:[#allocation37_spill]] %s3161_s15  ;;  %s3339_s20 = sand.u32 1, %s3141_s27  }
  0x2a   : > { %4227 = sst [smem:[#allocation38_spill]] %s3165_s16  ;;  %s3342_s21 = sshll.u32 %s3339_s20, 4 }
  0x2b   : > { %4228 = sst [smem:[#allocation39_spill]] %s3169_s17  ;;  %s3345_s22 = sshll.u32 %s3165_s16, 8 }
  0x2c   : > { %s4229_s1 = sld [smem:[#allocation46_spill]]  ;;  %s463_s15 = scalar_lea.vmem [#allocation5], %s3342_s21 }
  0x2d   : > { %s470_s14 = sshll.u32 %s463_s15, 4  ;;  %p3356_p4 = pnand %p4179_p2, %p101_p3  ;;  %s3360_s14 = int_to_ptr.vmem [resolvable:$true] %s470_s14 }
  0x2f   : > { %s4230_s12 = scalar_select %p3356_p4, 1, 0 }
  0x30   : > { %p3367_p6 = pneg %p3356_p4 }
  0x32   : > { %s3351_s13 = scalar_lea.hbm %s4229_s1, %s3345_s22  ;;  %s2642_s6 = scalar_lea.hbm %s4229_s1, 512 }
  0x33   : > { %s2637_s8 = scalar_lea.hbm %s3351_s13, 256  ;;  %p2643_p9 = scmp.lt.u32.totalorder %s3351_s13, %s4229_s1 }
  0x34   : > { %p2638_p5 = scmp.ne.s32.totalorder %s3351_s13, %s2637_s8  ;;  %p2644_p10 = scmp.lt.u32.totalorder %s2642_s6, %s2637_s8 }
  0x35   : > { %p2646_p12 = scmp.lt.u32.totalorder %s2637_s8, %s3351_s13 }
  0x36   : > { %p2640_p7 = pnand %p3367_p6, %p2638_p5  ;;  %p2645_p11 = por %p2644_p10, %p2643_p9 }
  0x38   : > { %p2641_p8 = pneg %p2640_p7  ;;  %p2647_p13 = por %p2646_p12, %p2645_p11 }
  0x3a   : > { %p2648_p1 = pnand %p2647_p13, %p2641_p8 }
  0x3c   : > { %2651 = shalt.err (!%p2648_p1)
}
  0x3d   : > { %s2652_s10 = scalar_lea.vmem %s3360_s14, 256  ;;  %s3175_s15 = smov [#allocation5]  }
  0x3e   : > { %p2653_p3 = scmp.ne.s32.totalorder %s3360_s14, %s2652_s10  ;;  %s2657_s24 = sshll.u32 %s3175_s15, 4  ;;  %s2658_s24 = int_to_ptr.vmem [resolvable:$false] %s2657_s24 }
  0x3f   : > { %s2659_s2 = scalar_lea.vmem %s2658_s24, 512  ;;  %p2660_p2 = scmp.lt.s32.totalorder %s3360_s14, %s2658_s24 }
  0x40   : > { %p2655_p5 = pnand %p2653_p3, %p3367_p6  ;;  %p2661_p0 = scmp.lt.s32.totalorder %s2659_s2, %s2652_s10 }
  0x42   : > { %p2656_p7 = pneg %p2655_p5  ;;  %p2662_p9 = por %p2661_p0, %p2660_p2 }
  0x44   : > { %p2663_p10 = pnand %p2662_p9, %p2656_p7 }
  0x46   : > { %2666 = shalt.err (!%p2663_p10)
}
  0x47   : > { %s4183_s4 = smov 64   ;;  %s4185_s6 = smov 4  }
  0x48   : > { %s4232_s8 = scalar_lea.sflag [#allocation6], %s3336_s19  ;;  %p2223_p0 = scmp.ge.s32.totalorder %s3173_s18, 1 }
  0x49   : > { %2458 = dma.hbm_to_vmem [thread:$0]  (!%p3356_p4), %s3351_s13, 256, %s3360_s14, %s4232_s8, %s4183_s4, %s4183_s4, %s4185_s6  }
  0x4a   : > { %p677_p2 = scmp.lt.s32.totalorder %s3173_s18, 5  ;;  %s4235_s3 = sld [smem:[#allocation48_spill]] }
  0x4b   : > { %s501_s1 = scalar_lea.vmem [#allocation8], %s3342_s21  ;;  %s3409_s26 = sshll.u32 %s3165_s16, 4 }
  0x4c   : > { %p3397_p8 = pnand %p2223_p0, %p677_p2  ;;  %s508_s0 = sshll.u32 %s501_s1, 4  ;;  %s3411_s0 = int_to_ptr.vmem [resolvable:$true] %s508_s0 }
  0x4d   : > { %s4188_s13 = scalar_lea.sflag [#allocation9], %s3336_s19 }
  0x4e   : > { %s4233_s10 = scalar_select %p3397_p8, 1, 0 }
  0x50   : > { %4234 = sst [smem:[#allocation40_spill]] %s4233_s10  ;;  %s3405_s2 = scalar_lea.hbm %s4235_s3, %s3345_s22 }
  0x51   : > { %s2667_s14 = scalar_lea.hbm %s3405_s2, 256  ;;  %s2672_s24 = scalar_lea.hbm %s4235_s3, 512 }
  0x52   : > { %p2668_p11 = scmp.ne.s32.totalorder %s3405_s2, %s2667_s14  ;;  %p2673_p1 = scmp.lt.u32.totalorder %s3405_s2, %s4235_s3 }
  0x53   : > { %p2674_p3 = scmp.lt.u32.totalorder %s2672_s24, %s2667_s14  ;;  %p2676_p7 = scmp.lt.u32.totalorder %s2667_s14, %s3405_s2 }
  0x54   : > { %p2670_p12 = pnand %p2668_p11, %p3367_p6 }
  0x55   : > { %p2675_p5 = por %p2674_p3, %p2673_p1 }
  0x56   : > { %p2671_p13 = pneg %p2670_p12 }
  0x57   : > { %p2677_p9 = por %p2676_p7, %p2675_p5 }
  0x59   : > { %p2678_p10 = pnand %p2677_p9, %p2671_p13 }
  0x5b   : > { %2681 = shalt.err (!%p2678_p10)
}
  0x5c   : > { %s2682_s1 = scalar_lea.vmem %s3411_s0, 256  ;;  %s3178_s8 = smov [#allocation8]  }
  0x5d   : > { %p2683_p0 = scmp.ne.s32.totalorder %s3411_s0, %s2682_s1  ;;  %s2687_s15 = sshll.u32 %s3178_s8, 4  ;;  %s2688_s15 = int_to_ptr.vmem [resolvable:$false] %s2687_s15 }
  0x5e   : > { %s2689_s4 = scalar_lea.vmem %s2688_s15, 512  ;;  %p2690_p12 = scmp.lt.s32.totalorder %s3411_s0, %s2688_s15 }
  0x5f   : > { %p2685_p2 = pnand %p2683_p0, %p3367_p6  ;;  %p2691_p8 = scmp.lt.s32.totalorder %s2689_s4, %s2682_s1 }
  0x61   : > { %p2686_p11 = pneg %p2685_p2  ;;  %p2692_p1 = por %p2691_p8, %p2690_p12 }
  0x63   : > { %p2693_p3 = pnand %p2692_p1, %p2686_p11 }
  0x65   : > { %2696 = shalt.err (!%p2693_p3)
}
  0x66   : > { %s4236_s6 = smov 4   ;;  %s4237_s14 = smov 64  }
  0x67   : > { %2464 = dma.hbm_to_vmem [thread:$0]  (!%p3356_p4), %s3405_s2, 256, %s3411_s0, %s4188_s13, %s4237_s14, %s4237_s14, %s4236_s6  }
  0x68   : > { %s4238_s5 = sld [smem:[#allocation50_spill]]  ;;  %s538_s15 = scalar_lea.vmem [#allocation11], %s3339_s20 }
  0x69   : > { %s545_s4 = sshll.u32 %s538_s15, 4  ;;  %s546_s4 = int_to_ptr.vmem [resolvable:$true] %s545_s4 }
  0x6e   : > { %s3444_s1 = scalar_lea.hbm %s4238_s5, %s3409_s26  ;;  %s2702_s2 = scalar_lea.hbm %s4238_s5, 32 }
  0x6f   : > { %s2697_s10 = scalar_lea.hbm %s3444_s1, 16  ;;  %p2703_p7 = scmp.lt.u32.totalorder %s3444_s1, %s4238_s5 }
  0x70   : > { %p2698_p8 = scmp.ne.s32.totalorder %s3444_s1, %s2697_s10  ;;  %p2704_p9 = scmp.lt.u32.totalorder %s2702_s2, %s2697_s10 }
  0x71   : > { %p2706_p0 = scmp.lt.u32.totalorder %s2697_s10, %s3444_s1 }
  0x72   : > { %p2700_p13 = pnand %p2698_p8, %p3367_p6  ;;  %p2705_p10 = por %p2704_p9, %p2703_p7 }
  0x74   : > { %p2701_p5 = pneg %p2700_p13  ;;  %p2707_p2 = por %p2706_p0, %p2705_p10 }
  0x76   : > { %p2708_p11 = pnand %p2707_p2, %p2701_p5 }
  0x78   : > { %2711 = shalt.err (!%p2708_p11)
}
  0x79   : > { %s2712_s15 = scalar_lea.vmem %s546_s4, 16  ;;  %s3179_s13 = smov [#allocation11]  }
  0x7a   : > { %p2713_p12 = scmp.ne.s32.totalorder %s546_s4, %s2712_s15  ;;  %s2717_s3 = sshll.u32 %s3179_s13, 4  ;;  %s2718_s3 = int_to_ptr.vmem [resolvable:$false] %s2717_s3 }
  0x7b   : > { %s2719_s25 = scalar_lea.vmem %s2718_s3, 32  ;;  %p2720_p8 = scmp.lt.s32.totalorder %s546_s4, %s2718_s3 }
  0x7c   : > { %p2715_p1 = pnand %p2713_p12, %p3367_p6  ;;  %p2721_p13 = scmp.lt.s32.totalorder %s2719_s25, %s2712_s15 }
  0x7e   : > { %p2716_p3 = pneg %p2715_p1  ;;  %p2722_p4 = por %p2721_p13, %p2720_p8 }
  0x80   : > { %p2723_p7 = pnand %p2722_p4, %p2716_p3 }
  0x82   : > { %2726 = shalt.err (!%p2723_p7)
}
  0x83   : > { %p4239_p9 = scmp.ne.s32.totalorder %s4230_s12, 0  ;;  %s4240_s10 = scalar_lea.sflag [#allocation12], %s3336_s19 }
  0x84   : > { %s4241_s7 = sld [smem:[#allocation52_spill]]  ;;  %s572_s3 = scalar_lea.vmem [#allocation14], %s3339_s20 }
  0x85   : > { %2470 = dma.hbm_to_vmem [thread:$0]  (!%p4239_p9), %s3444_s1, 16, %s546_s4, %s4240_s10  }
  0x86   : > { %s579_s24 = sshll.u32 %s572_s3, 4  ;;  %s580_s24 = int_to_ptr.vmem [resolvable:$true] %s579_s24 }
  0x8a   : > { %s3471_s13 = scalar_lea.hbm %s4241_s7, %s3409_s26  ;;  %s2732_s4 = scalar_lea.hbm %s4241_s7, 32 }
  0x8b   : > { %s2727_s15 = scalar_lea.hbm %s3471_s13, 16  ;;  %p2733_p0 = scmp.lt.u32.totalorder %s3471_s13, %s4241_s7 }
  0x8c   : > { %p2728_p4 = scmp.ne.s32.totalorder %s3471_s13, %s2727_s15  ;;  %p2734_p2 = scmp.lt.u32.totalorder %s2732_s4, %s2727_s15 }
  0x8d   : > { %p2736_p12 = scmp.lt.u32.totalorder %s2727_s15, %s3471_s13 }
  0x8e   : > { %p2730_p5 = pnand %p2728_p4, %p3367_p6  ;;  %p2735_p11 = por %p2734_p2, %p2733_p0 }
  0x90   : > { %p2731_p10 = pneg %p2730_p5  ;;  %p2737_p1 = por %p2736_p12, %p2735_p11 }
  0x92   : > { %p2738_p3 = pnand %p2737_p1, %p2731_p10 }
  0x94   : > { %2741 = shalt.err (!%p2738_p3)
}
  0x95   : > { %s2742_s2 = scalar_lea.vmem %s580_s24, 16  ;;  %s3180_s3 = smov [#allocation14]  }
  0x96   : > { %p2743_p8 = scmp.ne.s32.totalorder %s580_s24, %s2742_s2  ;;  %s2747_s8 = sshll.u32 %s3180_s3, 4  ;;  %s2748_s8 = int_to_ptr.vmem [resolvable:$false] %s2747_s8 }
  0x97   : > { %s2749_s25 = scalar_lea.vmem %s2748_s8, 32  ;;  %p2750_p4 = scmp.lt.s32.totalorder %s580_s24, %s2748_s8 }
  0x98   : > { %p2745_p13 = pnand %p2743_p8, %p3367_p6  ;;  %p2751_p5 = scmp.lt.s32.totalorder %s2749_s25, %s2742_s2 }
  0x9a   : > { %p2746_p7 = pneg %p2745_p13  ;;  %p2752_p9 = por %p2751_p5, %p2750_p4 }
  0x9c   : > { %p2753_p0 = pnand %p2752_p9, %p2746_p7 }
  0x9e   : > { %2756 = shalt.err (!%p2753_p0)
}
  0x9f   : > { %p4242_p2 = scmp.ne.s32.totalorder %s4230_s12, 0  ;;  %s4243_s15 = scalar_lea.sflag [#allocation15], %s3336_s19 }
  0xa0   : > { %s4244_s9 = sld [smem:[#allocation54_spill]]  ;;  %s607_s8 = scalar_lea.vmem [#allocation17], %s3342_s21 }
  0xa1   : > { %2476 = dma.hbm_to_vmem [thread:$0]  (!%p4242_p2), %s3471_s13, 16, %s580_s24, %s4243_s15  }
  0xa2   : > { %s614_s0 = sshll.u32 %s607_s8, 4  ;;  %s2219_s2 = sshll.u32 %s3339_s20, 6  ;;  %s3501_s0 = int_to_ptr.vmem [resolvable:$true] %s614_s0 }
  0xa3   : > { %s4192_s3 = scalar_lea.sflag [#allocation18], %s3336_s19 }
  0xa6   : > { %s3498_s10 = scalar_lea.hbm %s4244_s9, %s3345_s22  ;;  %s2762_s22 = scalar_lea.hbm %s4244_s9, 512 }
  0xa7   : > { %s2757_s25 = scalar_lea.hbm %s3498_s10, 256  ;;  %p2763_p12 = scmp.lt.u32.totalorder %s3498_s10, %s4244_s9 }
  0xa8   : > { %p2758_p9 = scmp.ne.s32.totalorder %s3498_s10, %s2757_s25  ;;  %p2764_p1 = scmp.lt.u32.totalorder %s2762_s22, %s2757_s25 }
  0xa9   : > { %p2766_p8 = scmp.lt.u32.totalorder %s2757_s25, %s3498_s10 }
  0xaa   : > { %p2760_p10 = pnand %p2758_p9, %p3367_p6  ;;  %p2765_p3 = por %p2764_p1, %p2763_p12 }
  0xac   : > { %p2761_p11 = pneg %p2760_p10  ;;  %p2767_p13 = por %p2766_p8, %p2765_p3 }
  0xae   : > { %p2768_p7 = pnand %p2767_p13, %p2761_p11 }
  0xb0   : > { %2771 = shalt.err (!%p2768_p7)
}
  0xb1   : > { %s2772_s21 = scalar_lea.vmem %s3501_s0, 256  ;;  %s3181_s4 = smov [#allocation17]  }
  0xb2   : > { %p2773_p4 = scmp.ne.s32.totalorder %s3501_s0, %s2772_s21  ;;  %s2777_s8 = sshll.u32 %s3181_s4, 4  ;;  %s2778_s8 = int_to_ptr.vmem [resolvable:$false] %s2777_s8 }
  0xb3   : > { %s2779_s13 = scalar_lea.vmem %s2778_s8, 512  ;;  %p2780_p9 = scmp.lt.s32.totalorder %s3501_s0, %s2778_s8 }
  0xb4   : > { %p2775_p5 = pnand %p2773_p4, %p3367_p6  ;;  %p2781_p10 = scmp.lt.s32.totalorder %s2779_s13, %s2772_s21 }
  0xb6   : > { %p2776_p0 = pneg %p2775_p5  ;;  %p2782_p12 = por %p2781_p10, %p2780_p9 }
  0xb8   : > { %p2783_p1 = pnand %p2782_p12, %p2776_p0 }
  0xba   : > { %2786 = shalt.err (!%p2783_p1)
}
  0xbb   : > { %2482 = dma.hbm_to_vmem [thread:$0]  (!%p4242_p2), %s3498_s10, 256, %s3501_s0, %s4192_s3, %s4237_s14, %s4237_s14, %s4236_s6  }
  0xbc   : > { %s2276_s25 = sshll.u32 %s3165_s16, 10  ;;  %s4245_s11 = sld [smem:[#allocation56_spill]] }
  0xbd   : > { %s645_s1 = scalar_lea.vmem [#allocation20], %s2219_s2  ;;  %s4191_s4 = scalar_lea.sflag [#allocation21], %s3336_s19 }
  0xbe   : > { %s652_s21 = sshll.u32 %s645_s1, 4  ;;  %s3539_s21 = int_to_ptr.vmem [resolvable:$true] %s652_s21 }
  0xc2   : > { %s3535_s15 = scalar_lea.hbm %s4245_s11, %s2276_s25  ;;  %s2792_s13 = scalar_lea.hbm %s4245_s11, 2048 }
  0xc3   : > { %s2787_s8 = scalar_lea.hbm %s3535_s15, 1024  ;;  %p2793_p13 = scmp.lt.u32.totalorder %s3535_s15, %s4245_s11 }
  0xc4   : > { %p2788_p11 = scmp.ne.s32.totalorder %s3535_s15, %s2787_s8  ;;  %p2794_p7 = scmp.lt.u32.totalorder %s2792_s13, %s2787_s8 }
  0xc5   : > { %p2796_p5 = scmp.lt.u32.totalorder %s2787_s8, %s3535_s15 }
  0xc6   : > { %p2790_p3 = pnand %p2788_p11, %p3367_p6  ;;  %p2795_p4 = por %p2794_p7, %p2793_p13 }
  0xc8   : > { %p2791_p8 = pneg %p2790_p3  ;;  %p2797_p0 = por %p2796_p5, %p2795_p4 }
  0xca   : > { %p2798_p9 = pnand %p2797_p0, %p2791_p8 }
  0xcc   : > { %2801 = shalt.err (!%p2798_p9)
}
  0xcd   : > { %s2802_s2 = scalar_lea.vmem %s3539_s21, 1024  ;;  %s3182_s22 = smov [#allocation20]  }
  0xce   : > { %p2803_p10 = scmp.ne.s32.totalorder %s3539_s21, %s2802_s2  ;;  %s2807_s1 = sshll.u32 %s3182_s22, 4  ;;  %s2808_s1 = int_to_ptr.vmem [resolvable:$false] %s2807_s1 }
  0xcf   : > { %s2809_s10 = scalar_lea.vmem %s2808_s1, 2048  ;;  %p2810_p11 = scmp.lt.s32.totalorder %s3539_s21, %s2808_s1 }
  0xd0   : > { %p2805_p12 = pnand %p2803_p10, %p3367_p6  ;;  %p2811_p3 = scmp.lt.s32.totalorder %s2809_s10, %s2802_s2 }
  0xd2   : > { %p2806_p1 = pneg %p2805_p12  ;;  %p2812_p13 = por %p2811_p3, %p2810_p11 }
  0xd4   : > { %p2813_p7 = pnand %p2812_p13, %p2806_p1 }
  0xd6   : > { %2816 = shalt.err (!%p2813_p7)
}
  0xd7   : > { %2488 = dma.hbm_to_vmem [thread:$0]  (!%p4242_p2), %s3535_s15, 1024, %s3539_s21, %s4191_s4, %s4237_s14, %s4237_s14, %s4236_s6  }
  0xd8   : > { %s3569_s8 = sadd.s32 4294967295, %s3173_s18   ;;  %s2198_s0 = sadd.s32 4294967294, %s3173_s18  }
  0xd9   : > { %s56_s13 = sadd.s32 1, %s3165_s16  ;;  %s4246_s25 = sld [smem:[#allocation32_spill]] }
  0xda   : > { %p57_p8 = scmp.ge.s32.totalorder %s56_s13, 2  ;;  %s4247_s24 = sld [smem:[#allocation33_spill]] }
  0xdb   : > { %s59_s2 = sadd.s32 1, %s3169_s17  ;;  %s66_s22 = sadd.s32 1, %s3153_s30 }
  0xdc   : > { %p73_p4 = scmp.ne.s32.totalorder %s3153_s30, %s3149_s29  ;;  %s4302_s13 = smov (%p57_p8, %s56_s13), 0 }
  0xdd   : > { %4248 = sst [smem:[#allocation41_spill]] %s4302_s13  ;;  %s4304_s2 = smov (!%p57_p8, %s59_s2), %s3169_s17 }
  0xde   : > { %p4249_p5 = scmp.eq.s32.totalorder %s3173_s18, 0  ;;  %p79_p9 = scmp.ne.s32.totalorder %s3149_s29, %s3145_s28 }
  0xdf   : > { %p61_p10 = scmp.ge.s32.totalorder %s4304_s2, 2  ;;  %p80_p12 = scmp.eq.s32.totalorder %s3569_s8, 0 }
  0xe0   : > { %p3585_p0 = por %p4249_p5, %p73_p4  ;;  %s89_s14 = ssub.s32 %s3165_s16, %s4302_s13 }
  0xe1   : > { %s92_s15 = sadd.s32 1, %s3141_s27  ;;  %s4306_s2 = smov (%p61_p10, %s4304_s2), 0 }
  0xe2   : > { %4251 = sst [smem:[#allocation42_spill]] %s4306_s2  ;;  %p3600_p1 = por %p80_p12, %p79_p9 }
  0xe3   : > { %p90_p11 = scmp.eq.s32.totalorder %s89_s14, 0  ;;  %s63_s1 = ssub.s32 %s3169_s17, %s4306_s2 }
  0xe4   : > { %s4252_s21 = scalar_select %p3600_p1, 1, 0 }
  0xe5   : > { %p105_p3 = scmp.ne.s32.totalorder %s4247_s24, %s4246_s25  ;;  %p64_p13 = scmp.eq.s32.totalorder %s63_s1, 0 }
  0xe6   : > { %p415_p7 = scmp.eq.s32.totalorder %s3569_s8, 3  ;;  %p421_p10 = scmp.eq.s32.totalorder %s2198_s0, 3 }
  0xe7   : > { %s3610_s10 = scalar_select %p90_p11, %s3141_s27, %s92_s15  }
  0xe8   : > { %s3613_s4 = scalar_select %p64_p13, %s3153_s30, %s66_s22  }
  0xe9   : > { %4253 = sst [smem:[#allocation43_spill]] %s3610_s10  ;;  %p3615_p8 = por %p105_p3, %p80_p12 }
  0xea   : > { %4254 = sst [smem:[#allocation44_spill]] %s3613_s4  ;;  %p3622_p5 = por %p415_p7, %p73_p4 }
  0xeb   : > { %s4255_s3 = scalar_select %p3615_p8, 1, 0 }
  0xec   : > { %s4256_s5 = scalar_select %p3622_p5, 1, 0 }
  0xed   : > { %s441_s25 = sand.u32 1, %s3153_s30   ;;  %p3630_p1 = por %p421_p10, %p79_p9 }
  0xee   : > { %s2201_s24 = sshll.u32 %s441_s25, 3  ;;  %s2202_s15 = sshll.u32 %s3169_s17, 7 }
  0xef   : > { %s4257_s14 = scalar_select %p3630_p1, 1, 0 }
  0xf0   : > { %s445_s22 = scalar_lea.vmem [#allocation2], %s2201_s24  ;;  %s4258_s11 = sld [smem:[#allocation45_spill]] }
  0xf1   : > { %s452_s1 = sshll.u32 %s445_s22, 4  ;;  %p4259_p4 = scmp.lt.s32.totalorder %s3173_s18, 4  ;;  %s3640_s1 = int_to_ptr.vmem [resolvable:$true] %s452_s1 }
  0xf2   : > { %s4261_s22 = sld [smem:[#allocation47_spill]]  ;;  %s483_s9 = scalar_lea.vmem [#allocation7], %s3339_s20 }
  0xf3   : > { %p3646_p9 = pnand %p4259_p4, %p3585_p0  ;;  %s442_s17 = scalar_lea.sflag [#allocation3], %s441_s25 }
  0xf5   : > { %p2819_p11 = pneg %p3646_p9 }
  0xf6   : > { %s3638_s2 = scalar_lea.hbm %s4258_s11, %s2202_s15  ;;  %s490_s15 = sshll.u32 %s483_s9, 4  ;;  %s3657_s15 = int_to_ptr.vmem [resolvable:$true] %s490_s15 }
  0xf7   : > { %s2817_s16 = scalar_lea.hbm %s3638_s2, 128  ;;  %s2822_s13 = scalar_lea.hbm %s4258_s11, 256 }
  0xf8   : > { %s3654_s7 = scalar_lea.hbm %s4261_s22, %s3409_s26  ;;  %p2818_p12 = scmp.ne.s32.totalorder %s3638_s2, %s2817_s16 }
  0xf9   : > { %p2823_p13 = scmp.lt.u32.totalorder %s3638_s2, %s4258_s11  ;;  %p2824_p7 = scmp.lt.u32.totalorder %s2822_s13, %s2817_s16 }
  0xfa   : > { %p2820_p0 = pnand %p2819_p11, %p2818_p12  ;;  %p2826_p4 = scmp.lt.u32.totalorder %s2817_s16, %s3638_s2 }
  0xfb   : > { %p2825_p10 = por %p2824_p7, %p2823_p13 }
  0xfc   : > { %p2821_p3 = pneg %p2820_p0 }
  0xfd   : > { %p2827_p1 = por %p2826_p4, %p2825_p10 }
  0xff   : > { %p2828_p5 = pnand %p2827_p1, %p2821_p3 }
 0x101   : > { %2831 = shalt.err (!%p2828_p5)
}
 0x102   : > { %s2832_s25 = scalar_lea.vmem %s3640_s1, 128  ;;  %s3183_s4 = smov [#allocation2]  }
 0x103   : > { %p2833_p12 = scmp.ne.s32.totalorder %s3640_s1, %s2832_s25  ;;  %s2837_s9 = sshll.u32 %s3183_s4, 4  ;;  %s2838_s9 = int_to_ptr.vmem [resolvable:$false] %s2837_s9 }
 0x104   : > { %s2839_s30 = scalar_lea.vmem %s2838_s9, 256  ;;  %p2840_p2 = scmp.lt.s32.totalorder %s3640_s1, %s2838_s9 }
 0x105   : > { %p2835_p0 = pnand %p2833_p12, %p2819_p11  ;;  %p2841_p13 = scmp.lt.s32.totalorder %s2839_s30, %s2832_s25 }
 0x107   : > { %p2836_p8 = pneg %p2835_p0  ;;  %p2842_p7 = por %p2841_p13, %p2840_p2 }
 0x109   : > { %p2843_p10 = pnand %p2842_p7, %p2836_p8 }
 0x10b   : > { %2846 = shalt.err (!%p2843_p10)
}
 0x10c   : > { %2455 = dma.hbm_to_vmem [thread:$0]  (!%p3646_p9), %s3638_s2, 128, %s3640_s1, %s442_s17  }
 0x10d   : > { %s2847_s16 = scalar_lea.hbm %s3654_s7, 16  ;;  %s2852_s24 = scalar_lea.hbm %s4261_s22, 32 }
 0x10e   : > { %p2848_p1 = scmp.ne.s32.totalorder %s3654_s7, %s2847_s16  ;;  %p2853_p2 = scmp.lt.u32.totalorder %s3654_s7, %s4261_s22 }
 0x10f   : > { %p2854_p8 = scmp.lt.u32.totalorder %s2852_s24, %s2847_s16  ;;  %p2856_p4 = scmp.lt.u32.totalorder %s2847_s16, %s3654_s7 }
 0x110   : > { %p2850_p5 = pnand %p2848_p1, %p3367_p6 }
 0x111   : > { %p2855_p3 = por %p2854_p8, %p2853_p2 }
 0x112   : > { %p2851_p11 = pneg %p2850_p5 }
 0x113   : > { %p2857_p12 = por %p2856_p4, %p2855_p3 }
 0x115   : > { %p2858_p0 = pnand %p2857_p12, %p2851_p11 }
 0x117   : > { %2861 = shalt.err (!%p2858_p0)
}
 0x118   : > { %s2862_s17 = scalar_lea.vmem %s3657_s15, 16  ;;  %s3184_s2 = smov [#allocation7]  }
 0x119   : > { %p2863_p9 = scmp.ne.s32.totalorder %s3657_s15, %s2862_s17  ;;  %s2867_s1 = sshll.u32 %s3184_s2, 4  ;;  %s2868_s1 = int_to_ptr.vmem [resolvable:$false] %s2867_s1 }
 0x11a   : > { %s2869_s0 = scalar_lea.vmem %s2868_s1, 32  ;;  %p2870_p10 = scmp.lt.s32.totalorder %s3657_s15, %s2868_s1 }
 0x11b   : > { %p2865_p13 = pnand %p2863_p9, %p3367_p6  ;;  %p2871_p1 = scmp.lt.s32.totalorder %s2869_s0, %s2862_s17 }
 0x11d   : > { %p2866_p7 = pneg %p2865_p13  ;;  %p2872_p5 = por %p2871_p1, %p2870_p10 }
 0x11f   : > { %p2873_p2 = pnand %p2872_p5, %p2866_p7 }
 0x121   : > { %2876 = shalt.err (!%p2873_p2)
}
 0x122   : > { %p4262_p11 = scmp.ne.s32.totalorder %s4230_s12, 0  ;;  %s4263_s9 = scalar_lea.sflag [#allocation6], %s3336_s19 }
 0x123   : > { %s4264_s6 = sld [smem:[#allocation49_spill]]  ;;  %s521_s24 = scalar_lea.vmem [#allocation10], %s3339_s20 }
 0x124   : > { %2461 = dma.hbm_to_vmem [thread:$0]  (!%p4262_p11), %s3654_s7, 16, %s3657_s15, %s4263_s9  }
 0x125   : > { %s528_s25 = sshll.u32 %s521_s24, 4  ;;  %s4265_s2 = sld [smem:[#allocation51_spill]]  ;;  %s529_s25 = int_to_ptr.vmem [resolvable:$true] %s528_s25 }
 0x129   : > { %s3711_s13 = scalar_lea.hbm %s4264_s6, %s3409_s26  ;;  %s2882_s9 = scalar_lea.hbm %s4264_s6, 32 }
 0x12a   : > { %s2877_s0 = scalar_lea.hbm %s3711_s13, 16  ;;  %p2883_p12 = scmp.lt.u32.totalorder %s3711_s13, %s4264_s6 }
 0x12b   : > { %s3718_s1 = scalar_lea.hbm %s4265_s2, %s3409_s26  ;;  %p2878_p8 = scmp.ne.s32.totalorder %s3711_s13, %s2877_s0 }
 0x12c   : > { %p2884_p0 = scmp.lt.u32.totalorder %s2882_s9, %s2877_s0  ;;  %p2886_p13 = scmp.lt.u32.totalorder %s2877_s0, %s3711_s13 }
 0x12d   : > { %p2880_p3 = pnand %p2878_p8, %p3367_p6 }
 0x12e   : > { %p2885_p9 = por %p2884_p0, %p2883_p12 }
 0x12f   : > { %p2881_p4 = pneg %p2880_p3 }
 0x130   : > { %p2887_p7 = por %p2886_p13, %p2885_p9 }
 0x132   : > { %p2888_p10 = pnand %p2887_p7, %p2881_p4 }
 0x134   : > { %2891 = shalt.err (!%p2888_p10)
}
 0x135   : > { %s2892_s24 = scalar_lea.vmem %s529_s25, 16  ;;  %s3185_s4 = smov [#allocation10]  }
 0x136   : > { %p2893_p1 = scmp.ne.s32.totalorder %s529_s25, %s2892_s24  ;;  %s2897_s17 = sshll.u32 %s3185_s4, 4  ;;  %s2898_s17 = int_to_ptr.vmem [resolvable:$false] %s2897_s17 }
 0x137   : > { %s2899_s7 = scalar_lea.vmem %s2898_s17, 32  ;;  %p2900_p8 = scmp.lt.s32.totalorder %s529_s25, %s2898_s17 }
 0x138   : > { %p2895_p5 = pnand %p2893_p1, %p3367_p6  ;;  %p2901_p3 = scmp.lt.s32.totalorder %s2899_s7, %s2892_s24 }
 0x13a   : > { %p2896_p2 = pneg %p2895_p5  ;;  %p2902_p11 = por %p2901_p3, %p2900_p8 }
 0x13c   : > { %p2903_p0 = pnand %p2902_p11, %p2896_p2 }
 0x13e   : > { %2906 = shalt.err (!%p2903_p0)
}
 0x13f   : > { %p4266_p12 = scmp.ne.s32.totalorder %s4230_s12, 0  ;;  %s4267_s0 = scalar_lea.sflag [#allocation9], %s3336_s19 }
 0x140   : > { %s555_s15 = scalar_lea.vmem [#allocation13], %s3339_s20  ;;  %s4268_s24 = sld [smem:[#allocation53_spill]] }
 0x141   : > { %2467 = dma.hbm_to_vmem [thread:$0]  (!%p4266_p12), %s3711_s13, 16, %s529_s25, %s4267_s0  }
 0x142   : > { %s562_s9 = sshll.u32 %s555_s15, 4  ;;  %s2907_s17 = scalar_lea.hbm %s3718_s1, 16  ;;  %s563_s9 = int_to_ptr.vmem [resolvable:$true] %s562_s9 }
 0x143   : > { %p2908_p11 = scmp.ne.s32.totalorder %s3718_s1, %s2907_s17  ;;  %s2912_s11 = scalar_lea.hbm %s4265_s2, 32 }
 0x144   : > { %p2913_p13 = scmp.lt.u32.totalorder %s3718_s1, %s4265_s2  ;;  %p2914_p7 = scmp.lt.u32.totalorder %s2912_s11, %s2907_s17 }
 0x145   : > { %p2910_p4 = pnand %p2908_p11, %p3367_p6  ;;  %p2916_p1 = scmp.lt.u32.totalorder %s2907_s17, %s3718_s1 }
 0x146   : > { %s3744_s4 = scalar_lea.hbm %s4268_s24, %s3409_s26  ;;  %p2915_p10 = por %p2914_p7, %p2913_p13 }
 0x147   : > { %p2911_p9 = pneg %p2910_p4 }
 0x148   : > { %p2917_p5 = por %p2916_p1, %p2915_p10 }
 0x14a   : > { %p2918_p2 = pnand %p2917_p5, %p2911_p9 }
 0x14c   : > { %2921 = shalt.err (!%p2918_p2)
}
 0x14d   : > { %s2922_s13 = scalar_lea.vmem %s563_s9, 16  ;;  %s3186_s25 = smov [#allocation13]  }
 0x14e   : > { %p2923_p8 = scmp.ne.s32.totalorder %s563_s9, %s2922_s13  ;;  %s2927_s0 = sshll.u32 %s3186_s25, 4  ;;  %s2928_s0 = int_to_ptr.vmem [resolvable:$false] %s2927_s0 }
 0x14f   : > { %s2929_s6 = scalar_lea.vmem %s2928_s0, 32  ;;  %p2930_p11 = scmp.lt.s32.totalorder %s563_s9, %s2928_s0 }
 0x150   : > { %p2925_p3 = pnand %p2923_p8, %p3367_p6  ;;  %p2931_p4 = scmp.lt.s32.totalorder %s2929_s6, %s2922_s13 }
 0x152   : > { %p2926_p0 = pneg %p2925_p3  ;;  %p2932_p12 = por %p2931_p4, %p2930_p11 }
 0x154   : > { %p2933_p7 = pnand %p2932_p12, %p2926_p0 }
 0x156   : > { %2936 = shalt.err (!%p2933_p7)
}
 0x157   : > { %p4269_p13 = scmp.ne.s32.totalorder %s4230_s12, 0  ;;  %s4270_s11 = scalar_lea.sflag [#allocation12], %s3336_s19 }
 0x158   : > { %s589_s10 = scalar_lea.vmem [#allocation16], %s3339_s20  ;;  %s4271_s16 = sld [smem:[#allocation55_spill]] }
 0x159   : > { %2473 = dma.hbm_to_vmem [thread:$0]  (!%p4269_p13), %s3718_s1, 16, %s563_s9, %s4270_s11  }
 0x15a   : > { %s596_s22 = sshll.u32 %s589_s10, 4  ;;  %s2937_s13 = scalar_lea.hbm %s3744_s4, 16  ;;  %s597_s22 = int_to_ptr.vmem [resolvable:$true] %s596_s22 }
 0x15b   : > { %p2938_p12 = scmp.ne.s32.totalorder %s3744_s4, %s2937_s13  ;;  %s2942_s6 = scalar_lea.hbm %s4268_s24, 32 }
 0x15c   : > { %p2943_p1 = scmp.lt.u32.totalorder %s3744_s4, %s4268_s24  ;;  %p2944_p5 = scmp.lt.u32.totalorder %s2942_s6, %s2937_s13 }
 0x15d   : > { %p2940_p9 = pnand %p2938_p12, %p3367_p6  ;;  %p2946_p8 = scmp.lt.u32.totalorder %s2937_s13, %s3744_s4 }
 0x15e   : > { %s4272_s7 = smov %s4271_s16  ;;  %s3770_s17 = scalar_lea.hbm %s4271_s16, %s3409_s26 }
 0x15f   : > { %p2941_p10 = pneg %p2940_p9  ;;  %p2945_p2 = por %p2944_p5, %p2943_p1 }
 0x161   : > { %p2947_p3 = por %p2946_p8, %p2945_p2 }
 0x163   : > { %p2948_p0 = pnand %p2947_p3, %p2941_p10 }
 0x165   : > { %2951 = shalt.err (!%p2948_p0)
}
 0x166   : > { %s2952_s1 = scalar_lea.vmem %s597_s22, 16  ;;  %s3187_s9 = smov [#allocation16]  }
 0x167   : > { %p2953_p11 = scmp.ne.s32.totalorder %s597_s22, %s2952_s1  ;;  %s2957_s11 = sshll.u32 %s3187_s9, 4  ;;  %s2958_s11 = int_to_ptr.vmem [resolvable:$false] %s2957_s11 }
 0x168   : > { %s2959_s10 = scalar_lea.vmem %s2958_s11, 32  ;;  %p2960_p12 = scmp.lt.s32.totalorder %s597_s22, %s2958_s11 }
 0x169   : > { %p2955_p4 = pnand %p2953_p11, %p3367_p6  ;;  %p2961_p9 = scmp.lt.s32.totalorder %s2959_s10, %s2952_s1 }
 0x16b   : > { %p2956_p7 = pneg %p2955_p4  ;;  %p2962_p13 = por %p2961_p9, %p2960_p12 }
 0x16d   : > { %p2963_p1 = pnand %p2962_p13, %p2956_p7 }
 0x16f   : > { %2966 = shalt.err (!%p2963_p1)
}
 0x170   : > { %p4273_p5 = scmp.ne.s32.totalorder %s4230_s12, 0  ;;  %s4274_s27 = scalar_lea.sflag [#allocation15], %s3336_s19 }
 0x171   : > { %s627_s2 = scalar_lea.vmem [#allocation19], %s3339_s20  ;;  %s4275_s13 = sld [smem:[#allocation57_spill]] }
 0x172   : > { %2479 = dma.hbm_to_vmem [thread:$0]  (!%p4273_p5), %s3744_s4, 16, %s597_s22, %s4274_s27  }
 0x173   : > { %s634_s15 = sshll.u32 %s627_s2, 4  ;;  %s2967_s0 = scalar_lea.hbm %s3770_s17, 16  ;;  %s635_s15 = int_to_ptr.vmem [resolvable:$true] %s634_s15 }
 0x174   : > { %p2968_p13 = scmp.ne.s32.totalorder %s3770_s17, %s2967_s0  ;;  %s2972_s9 = scalar_lea.hbm %s4272_s7, 32 }
 0x175   : > { %p2973_p8 = scmp.lt.u32.totalorder %s3770_s17, %s4272_s7  ;;  %p2974_p3 = scmp.lt.u32.totalorder %s2972_s9, %s2967_s0 }
 0x176   : > { %p2970_p10 = pnand %p2968_p13, %p3367_p6  ;;  %p2976_p11 = scmp.lt.u32.totalorder %s2967_s0, %s3770_s17 }
 0x177   : > { %s3796_s25 = scalar_lea.hbm %s4275_s13, %s3409_s26  ;;  %p2975_p0 = por %p2974_p3, %p2973_p8 }
 0x178   : > { %p2971_p2 = pneg %p2970_p10 }
 0x179   : > { %p2977_p4 = por %p2976_p11, %p2975_p0 }
 0x17b   : > { %p2978_p7 = pnand %p2977_p4, %p2971_p2 }
 0x17d   : > { %2981 = shalt.err (!%p2978_p7)
}
 0x17e   : > { %s2982_s26 = scalar_lea.vmem %s635_s15, 16  ;;  %s3188_s4 = smov [#allocation19]  }
 0x17f   : > { %p2983_p12 = scmp.ne.s32.totalorder %s635_s15, %s2982_s26  ;;  %s2987_s22 = sshll.u32 %s3188_s4, 4  ;;  %s2988_s22 = int_to_ptr.vmem [resolvable:$false] %s2987_s22 }
 0x180   : > { %s2989_s27 = scalar_lea.vmem %s2988_s22, 32  ;;  %p2990_p13 = scmp.lt.s32.totalorder %s635_s15, %s2988_s22 }
 0x181   : > { %p2985_p9 = pnand %p2983_p12, %p3367_p6  ;;  %p2991_p10 = scmp.lt.s32.totalorder %s2989_s27, %s2982_s26 }
 0x183   : > { %p2986_p1 = pneg %p2985_p9  ;;  %p2992_p5 = por %p2991_p10, %p2990_p13 }
 0x185   : > { %p2993_p3 = pnand %p2992_p5, %p2986_p1 }
 0x187   : > { %2996 = shalt.err (!%p2993_p3)
}
 0x188   : > { %p4276_p8 = scmp.ne.s32.totalorder %s4230_s12, 0  ;;  %s4277_s2 = scalar_lea.sflag [#allocation18], %s3336_s19 }
 0x189   : > { %s665_s30 = scalar_lea.vmem [#allocation22], %s3339_s20  ;;  %s2997_s0 = scalar_lea.hbm %s3796_s25, 16 }
 0x18a   : > { %2485 = dma.hbm_to_vmem [thread:$0]  (!%p4276_p8), %s3770_s17, 16, %s635_s15, %s4277_s2  }
 0x18b   : > { %s672_s16 = sshll.u32 %s665_s30, 4  ;;  %p2998_p2 = scmp.ne.s32.totalorder %s3796_s25, %s2997_s0  ;;  %s673_s16 = int_to_ptr.vmem [resolvable:$true] %s672_s16 }
 0x18c   : > { %s3002_s9 = scalar_lea.hbm %s4275_s13, 32  ;;  %p3003_p11 = scmp.lt.u32.totalorder %s3796_s25, %s4275_s13 }
 0x18d   : > { %p3000_p5 = pnand %p2998_p2, %p3367_p6  ;;  %p3004_p4 = scmp.lt.u32.totalorder %s3002_s9, %s2997_s0 }
 0x18e   : > { %p3006_p12 = scmp.lt.u32.totalorder %s2997_s0, %s3796_s25 }
 0x18f   : > { %p3001_p0 = pneg %p3000_p5  ;;  %p3005_p7 = por %p3004_p4, %p3003_p11 }
 0x191   : > { %p3007_p9 = por %p3006_p12, %p3005_p7 }
 0x193   : > { %p3008_p1 = pnand %p3007_p9, %p3001_p0 }
 0x195   : > { %3011 = shalt.err (!%p3008_p1)
}
 0x196   : > { %s3012_s20 = scalar_lea.vmem %s673_s16, 16  ;;  %s3189_s17 = smov [#allocation22]  }
 0x197   : > { %p3013_p13 = scmp.ne.s32.totalorder %s673_s16, %s3012_s20  ;;  %s3017_s15 = sshll.u32 %s3189_s17, 4  ;;  %s3018_s15 = int_to_ptr.vmem [resolvable:$false] %s3017_s15 }
 0x198   : > { %s3019_s26 = scalar_lea.vmem %s3018_s15, 32  ;;  %p3020_p2 = scmp.lt.s32.totalorder %s673_s16, %s3018_s15 }
 0x199   : > { %p3015_p10 = pnand %p3013_p13, %p3367_p6  ;;  %p3021_p5 = scmp.lt.s32.totalorder %s3019_s26, %s3012_s20 }
 0x19b   : > { %p3016_p3 = pneg %p3015_p10  ;;  %p3022_p8 = por %p3021_p5, %p3020_p2 }
 0x19d   : > { %p3023_p4 = pnand %p3022_p8, %p3016_p3 }
 0x19f   : > { %3026 = shalt.err (!%p3023_p4)
}
 0x1a0   : > { %p4278_p11 = scmp.ne.s32.totalorder %s4230_s12, 0  ;;  %s4279_s4 = scalar_lea.sflag [#allocation21], %s3336_s19 }
 0x1a1   : > { %s4280_s22 = sld [smem:[#allocation40_spill]] }
 0x1a2   : > { %2491 = dma.hbm_to_vmem [thread:$0]  (!%p4278_p11), %s3796_s25, 16, %s673_s16, %s4279_s4  }
 0x1a7   : > { %p4281_p0 = scmp.ne.s32.totalorder %s4280_s22, 0 }
 0x1a8   : > { %s3840_s23 = sand.u32 (!%p4281_p0), 1, %s3149_s29   ;;  %p4282_p6 = scmp.ne.s32.totalorder (!%p4281_p0), %s4252_s21, 0 }
 0x1a9   : > { %681 = sbr.rel (%p4281_p0) target bundleno = 4714 (0x126a), region = 72  ;;  %s2224_s27 = sshll.u32 (!%p4281_p0), %s3840_s23, 3 }
 0x1aa   : > { %s684_s2 = scalar_lea.sflag (!%p4281_p0), [#allocation3], %s3840_s23  ;;  %s3846_s30 = scalar_lea.vmem (!%p4281_p0), [#allocation2], %s2224_s27 }
 0x1b0   : > { %3100 = dma.done.wait (%p4282_p6), %s684_s2, 128  }
 0x1b1   : > { %3102 = vsyncadd (%p4282_p6), %s684_s2, 4294967168  ;;  %s4283_s12 = sld [smem:[#allocation33_spill]]  ;;  %s3853_s19 = sand.u32 1, %s3569_s8  }
 0x1b2   : > { %s693_s0 = scalar_lea.sflag [#allocation6], %s3853_s19  ;;  %p4284_p8 = scmp.ne.s32.totalorder %s4255_s3, 0 }
 0x1b7   : > { %s3856_s25 = sand.u32 1, %s4283_s12  }
 0x1b8   : > { %s3859_s16 = sshll.u32 %s3856_s25, 4 }
 0x1b9   : > { %s696_s6 = scalar_lea.vmem [#allocation5], %s3859_s16 }
 0x1ba   : > { %3104 = dma.done.wait (%p4284_p8), %s693_s0, 272  }
 0x1bb   : > { %3106 = vsyncadd (%p4284_p8), %s693_s0, 4294967024  ;;  %s704_s8 = scalar_lea.vmem [#allocation7], %s3856_s25  ;;  %s710_s21 = scalar_lea.sflag [#allocation9], %s3853_s19 }
 0x1bc   : > { %s3870_s1 = scalar_lea.vmem [#allocation8], %s3859_s16 }
 0x1bd   : > { %3108 = dma.done.wait (%p4284_p8), %s710_s21, 272  }
 0x1be   : > { %3110 = vsyncadd (%p4284_p8), %s710_s21, 4294967024  ;;  %s721_s9 = scalar_lea.vmem [#allocation10], %s3856_s25  ;;  %s727_s11 = scalar_lea.sflag [#allocation12], %s3853_s19 }
 0x1bf   : > { %s729_s10 = scalar_lea.vmem [#allocation11], %s3856_s25 }
 0x1c0   : > { %3112 = dma.done.wait (%p4284_p8), %s727_s11, 32  }
 0x1c1   : > { %3114 = vsyncadd (%p4284_p8), %s727_s11, 4294967264  ;;  %s737_s20 = scalar_lea.vmem [#allocation13], %s3856_s25  ;;  %s743_s17 = scalar_lea.sflag [#allocation15], %s3853_s19 }
 0x1c2   : > { %s745_s15 = scalar_lea.vmem [#allocation14], %s3856_s25 }
 0x1c3   : > { %3116 = dma.done.wait (%p4284_p8), %s743_s17, 32  }
 0x1c4   : > { %3118 = vsyncadd (%p4284_p8), %s743_s17, 4294967264  ;;  %s753_s26 = scalar_lea.vmem [#allocation16], %s3856_s25  ;;  %s759_s4 = scalar_lea.sflag [#allocation18], %s3853_s19 }
 0x1c5   : > { %s762_s22 = scalar_lea.vmem [#allocation17], %s3859_s16 }
 0x1c6   : > { %3120 = dma.done.wait (%p4284_p8), %s759_s4, 272  }
 0x1c7   : > { %3122 = vsyncadd (%p4284_p8), %s759_s4, 4294967024  ;;  %s2228_s2 = sshll.u32 %s3856_s25, 6  ;;  %s770_s12 = scalar_lea.vmem [#allocation19], %s3856_s25 }
 0x1c8   : > { %s776_s0 = scalar_lea.sflag [#allocation21], %s3853_s19  ;;  %s3900_s21 = scalar_lea.vmem [#allocation20], %s2228_s2 }
 0x1c9   : > { %3124 = dma.done.wait (%p4284_p8), %s776_s0, 1040  }
 0x1ca   : > { %3126 = vsyncadd (%p4284_p8), %s776_s0, 4294966256  ;;  %s787_s11 = scalar_lea.vmem [#allocation22], %s3856_s25  ;;  %s3909_s17 = scalar_lea.vmem [#allocation23], %s2224_s27 }
 0x1cb   : > { %s4285_s4 = sld [smem:[#allocation36_spill]] }
 0x1d1   : > { %p2230_p7 = scmp.ne.s32.totalorder %s4285_s4, 0 }
 0x1d2   : > { %v887_v0 = vld [vmem:[%s3846_s30] sm:$0xff] (!%p2230_p7)  ;;  %vm888_vm0 = vcmask (!%p2230_p7), 261120  }
 0x1d3   : > { %886 = sbr.rel (%p2230_p7) target bundleno = 474 (0x1da), region = 128  ;;  %889 = vst.msk [vmem:[%s3909_s17] sm:$0xff] (!%p2230_p7), %vm888_vm0, %v887_v0 }
 0x1da PF: > { %v3915_v1 = vld [vmem:[%s3909_s17] sm:$0xff]  ;;  %vm893_vm1 = vcmask 261120   ;;  %v2601_v8 = vld [vmem:[%s696_s6] sm:$0xff]   ;;  %v3190_v9 = vmov 0.0   ;;  %vm3191_vm2 = vmmov 0   ;;  %s3192_s3 = smov 64   ;;  %v989_v32 = vlaneseq }
 0x1db   : > { %v894_v2 = vsel %vm893_vm1, %v3915_v1, 0.0  ;;  %2316 = vmatprep.subr.bf16.mxu1 %v3190_v9  ;;  %2320 = vmatprep.mubr.msk.bf16.mxu1 %vm3191_vm2, %v3190_v9  ;;  %v2602_v10 = vld [vmem:[%s696_s6 + $0x8] sm:$0xff]   ;;  %v2231_v15 = vld [vmem:[%s729_s10] ss:$0 sm:$0xff]  ;;  %s3193_s27 = smov 96   ;;  %vm998_vm3 = vcmask 64512  }
 0x1dc   : > { %895 = vadd.xlane.f32.xlu0 %v894_v2  ;;  %2317 = vmatpush3.bf16.msra.mxu1 %v2601_v8  ;;  %v2232_v17 = vld [vmem:[%s737_s20] ss:$0 sm:$0xff]  ;;  %vm1064_vm4 = vcmask 1043456   ;;  %v3954_v33 = vshrl.u32 %v989_v32, 7  ;;  %v3956_v34 = vand.u32 127, %v989_v32  ;;  %s3194_s30 = smov 88  }
 0x1dd   : > { %2342 = vmatprep.subr.bf16.mxu0 %v3190_v9  ;;  %2318 = vmatprep.subr.bf16.mxu1 %v3190_v9  ;;  %v2233_v21 = vld [vmem:[%s704_s8] ss:$0 sm:$0xff]  ;;  %s3195_s19 = smov 120   ;;  %s3196_s6 = smov 56  }
 0x1de   : > { %2344 = vmatprep.mubr.msk.bf16.mxu0 %vm3191_vm2, %v3190_v9  ;;  %vm993_vm5 = vcmp.le.s32.totalorder %v3956_v34, %v3954_v33  ;;  %s3197_s8 = smov 80   ;;  %s3198_s10 = smov 112   ;;  %v2250_v34 = vld [vmem:[%s3870_s1 + $0xc] sm:$0xf] }
 0x1df   : > { %s3199_s20 = smov 48   ;;  %s3200_s2 = smov 72  }
 0x1e0   : > { %2319 = vmatpush3.bf16.msra.mxu1 %v2602_v10  ;;  %v2241_v10 = vld [vmem:[%s3870_s1 + $0x4] sm:$0xf]  ;;  %s3201_s0 = smov 104   ;;  %s3202_s4 = smov 40  }
 0x1e1   : > { %2324 = vmatprep.subr.bf16.mxu1 %v3190_v9  ;;  %s4286_s16 = sld [smem:[#allocation37_spill]]  ;;  %s1869_s25 = scalar_lea.sflag [#allocation4], %s3840_s23 }
 0x1e2   : > { %p4288_p9 = scmp.ne.s32.totalorder %s4256_s5, 0 }
 0x269   : > { %v896_v3 = vpop.xlane.xlu0 %895 }
 0x26a   : > { %v898_v4 = vmul.f32 0.03125, %v896_v3 }
 0x26c   : > { %v899_v5 = vsub.f32 %v3915_v1, %v898_v4 }
 0x26e   : > { %v900_v6 = vmul.f32 %v899_v5, %v899_v5 }
 0x270   : > { %v901_v7 = vsel %vm893_vm1, %v900_v6, 0.0 }
 0x271   : > { %902 = vadd.xlane.f32.xlu0 %v901_v7 }
 0x2fe   : > { %v903_v11 = vpop.xlane.xlu0 %902 }
 0x2ff   : > { %v904_v12 = vmul.f32 0.03125, %v903_v11  ;;  %v1229_v11 = vsel %vm1064_vm4, %v2241_v10, 0 }
 0x301   : > { %v905_v13 = vadd.f32 1e-05, %v904_v12 }
 0x303   : > { %2613 = vrsqrt.f32 %v905_v13 }
 0x30d   : > { %v2614_v14 = vpop.eup %2613 }
 0x30e   : > { %v907_v16 = vmul.f32 %v2614_v14, %v899_v5  ;;  %v1109_v14 = vld [vmem:[%s3870_s1] sm:$0xf] }
 0x310   : > { %v914_v18 = vmul.f32 %v2231_v15, %v907_v16 }
 0x312   : > { %v921_v19 = vadd.f32 %v2232_v17, %v914_v18  ;;  %v1275_v17 = vsel %vm1064_vm4, %v1109_v14, 0 }
 0x314   : > { %v922_v20 = vpack.c.bf16 %v921_v19, %v921_v19 }
 0x316   : > { %2321 = vmatmul.mubr.msk.bf16.vlgmr.msra.gmra.mrb[0].mxu1 %vm893_vm1, %v922_v20 }
 0x317   : > { %2326 = vmatprep.mubr.msk.bf16.mxu1 %vm3191_vm2, %v3190_v9 }
 0x3e9   : > { %v983_v22 = vpop.f32.mrb[0].mxu1 }
 0x3ea   : > { %v984_v23 = vadd.f32 %v2233_v21, %v983_v22  ;;  %v2322_v24 = vpop.f32.mrb[1].mxu1 }
 0x3eb   : > { %v986_v25 = vpop.f32.mrb[2].mxu1 }
 0x3ec   : > { %v3942_v26 = vpack.c.bf16 %v984_v23, %v984_v23  ;;  %v2323_v27 = vpop.f32.mrb[3].mxu1 }
 0x3ee   : > { %1059 = vrot.lane.b32.xlu0 %v3942_v26, %s3192_s3  ;;  %996 = vrot.lane.b32.xlu1 %v3942_v26, %s3193_s27 }
 0x460   : > { %v997_v28 = vpop.permute.xlu1 %996  ;;  %v1060_v30 = vpop.permute.xlu0 %1059 }
 0x461   : > { %v1003_v29 = vsel %vm998_vm3, %v997_v28, 0  ;;  %v1066_v31 = vsel %vm1064_vm4, %v1060_v30, 0 }
 0x462   : > { %2325 = vmatpush3.bf16.xpose.msra.mxu1 %v1003_v29 }
 0x463   : > { %2330 = vmatprep.subr.bf16.mxu1 %v3190_v9 }
 0x469   : > { %2327 = vmatmul.mubr.msk.bf16.vlgmr.msra.gmra.mrb[4].mxu1 %vm998_vm3, %v3942_v26 }
 0x46a   : > { %2331 = vmatpush3.bf16.msra.mxu1 %v1066_v31  ;;  %2332 = vmatprep.mubr.msk.bf16.mxu1 %vm3191_vm2, %v3190_v9 }
 0x46b   : > { %2336 = vmatprep.subr.bf16.mxu1 %v3190_v9 }
 0x53c   : > { %v1039_v35 = vpop.f32.mrb[4].mxu1 }
 0x53d   : > { %v1045_v36 = vmul.f32 0.35355338, %v1039_v35  ;;  %v2328_v37 = vpop.f32.mrb[5].mxu1 }
 0x53e   : > { %v1042_v38 = vpop.f32.mrb[6].mxu1 }
 0x53f   : > { %v2329_v39 = vpop.f32.mrb[7].mxu1  ;;  %v1046_v40 = vsel %vm993_vm5, %v1045_v36, -1e+30 }
 0x540   : > { %v1047_v41 = vsel %vm998_vm3, %v1046_v40, -inf }
 0x541   : > { %1048 = vmax.xlane.f32.xlu1 %v1047_v41 }
 0x5ce   : > { %v1049_v42 = vpop.xlane.xlu1 %1048 }
 0x5cf   : > { %v1050_v43 = vsub.f32 %v1046_v40, %v1049_v42 }
 0x5d1   : > { %v1051_v44 = vmul.f32 1.442695, %v1050_v43 }
 0x5d3   : > { %2615 = vpow2.f32 %v1051_v44 }
 0x5dd   : > { %v2616_v45 = vpop.eup %2615 }
 0x5de   : > { %v1053_v46 = vsel %vm998_vm3, %v2616_v45, 0.0 }
 0x5df   : > { %1054 = vadd.xlane.f32.xlu0 %v1053_v46 }
 0x5f5   : > { %1112 = vrot.lane.b32.xlu0 %v3942_v26, %s3194_s30 }
 0x5f9   : > { %1110 = vrot.lane.b32.xlu0 %v3942_v26, %s3195_s19 }
 0x66c   : > { %v1055_v47 = vpop.xlane.xlu0 %1054 }
 0x66d   : > { %2617 = vrcp.f32 %v1055_v47 }
 0x670   : > { %v1113_v50 = vpop.permute.xlu0 %1112 }
 0x671   : > { %v1118_v52 = vsel %vm998_vm3, %v1113_v50, 0 }
 0x674   : > { %v1111_v53 = vpop.permute.xlu0 %1110 }
 0x677   : > { %v2618_v48 = vpop.eup %2617 }
 0x678   : > { %v1057_v49 = vmul.f32 %v2618_v48, %v2616_v45 }
 0x67a   : > { %v1058_v51 = vpack.c.bf16 %v1057_v49, %v1057_v49 }
 0x67c   : > { %2333 = vmatmul.mubr.msk.bf16.vlgmr.msra.gmra.mrb[8].mxu1 %vm998_vm3, %v1058_v51 }
 0x67d   : > { %2337 = vmatpush3.bf16.xpose.msra.mxu1 %v1118_v52  ;;  %2338 = vmatprep.mubr.msk.bf16.mxu1 %vm3191_vm2, %v3190_v9 }
 0x67e   : > { %2348 = vmatprep.subr.bf16.mxu1 %v3190_v9 }
 0x684   : > { %2339 = vmatmul.mubr.msk.bf16.vlgmr.msra.gmra.mrb[12].mxu1 %vm998_vm3, %v1111_v53 }
 0x685   : > { %2350 = vmatprep.mubr.msk.bf16.mxu1 %vm3191_vm2, %v3190_v9  ;;  %2349 = vmatpush3.bf16.msra.mxu1 %v1229_v11 }
 0x686   : > { %2360 = vmatprep.subr.bf16.mxu1 %v3190_v9 }
 0x74f   : > { %v1102_v54 = vpop.f32.mrb[8].mxu1 }
 0x750   : > { %v2334_v55 = vpop.f32.mrb[9].mxu1  ;;  %v1108_v19 = vpack.c.bf16 %v1102_v54, %v1102_v54 }
 0x751   : > { %v1105_v56 = vpop.f32.mrb[10].mxu1 }
 0x752   : > { %v2335_v57 = vpop.f32.mrb[11].mxu1 }
 0x757   : > { %v1154_v58 = vpop.f32.mrb[12].mxu1 }
 0x758   : > { %v1160_v59 = vmul.f32 0.35355338, %v1154_v58  ;;  %v2340_v60 = vpop.f32.mrb[13].mxu1 }
 0x759   : > { %v1157_v61 = vpop.f32.mrb[14].mxu1  ;;  %v2246_v60 = vld [vmem:[%s3870_s1 + $0x8] sm:$0xf]  ;;  %s2270_s1 = sshll.u32 %s4286_s16, 7 }
 0x75a   : > { %v2341_v62 = vpop.f32.mrb[15].mxu1  ;;  %v1161_v63 = vsel %vm993_vm5, %v1160_v59, -1e+30  ;;  %v1436_v61 = vsel %vm1064_vm4, %v2246_v60, 0  ;;  %v2605_v60 = vld [vmem:[%s3900_s21] sm:$0xff]  }
 0x75b   : > { %v1162_v0 = vsel %vm998_vm3, %v1161_v63, -inf }
 0x75c   : > { %1163 = vmax.xlane.f32.xlu1 %v1162_v0 }
 0x76d   : > { %1174 = vrot.lane.b32.xlu1 %v3942_v26, %s3196_s6 }
 0x771   : > { %1319 = vrot.lane.b32.xlu1 %v3942_v26, %s3197_s8 }
 0x775   : > { %1317 = vrot.lane.b32.xlu1 %v3942_v26, %s3198_s10 }
 0x7e9   : > { %v1164_v2 = vpop.xlane.xlu1 %1163 }
 0x7ea   : > { %v1165_v3 = vsub.f32 %v1161_v63, %v1164_v2 }
 0x7ec   : > { %v1166_v4 = vmul.f32 1.442695, %v1165_v3 }
 0x7ed   : > { %v1175_v5 = vpop.permute.xlu1 %1174 }
 0x7ee   : > { %2619 = vpow2.f32 %v1166_v4  ;;  %v1180_v6 = vsel %vm1064_vm4, %v1175_v5, 0 }
 0x7ef   : > { %2343 = vmatpush3.bf16.msra.mxu0 %v1180_v6 }
 0x7f0   : > { %2354 = vmatprep.subr.bf16.mxu0 %v3190_v9 }
 0x7f1   : > { %v1320_v21 = vpop.permute.xlu1 %1319 }
 0x7f2   : > { %v1325_v27 = vsel %vm998_vm3, %v1320_v21, 0 }
 0x7f5   : > { %v1318_v31 = vpop.permute.xlu1 %1317 }
 0x7f8   : > { %v2620_v7 = vpop.eup %2619 }
 0x7f9   : > { %v1168_v8 = vsel %vm998_vm3, %v2620_v7, 0.0 }
 0x7fa   : > { %1169 = vadd.xlane.f32.xlu0 %v1168_v8 }
 0x810   : > { %1381 = vrot.lane.b32.xlu0 %v3942_v26, %s3199_s20 }
 0x887   : > { %v1170_v12 = vpop.xlane.xlu0 %1169 }
 0x888   : > { %2621 = vrcp.f32 %v1170_v12 }
 0x88b   : > { %v1382_v18 = vpop.permute.xlu0 %1381 }
 0x88c   : > { %v1387_v20 = vsel %vm1064_vm4, %v1382_v18, 0  ;;  %v1598_v18 = vsel %vm1064_vm4, %v2250_v34, 0 }
 0x892   : > { %v2622_v13 = vpop.eup %2621 }
 0x893   : > { %v1172_v15 = vmul.f32 %v2622_v13, %v2620_v7 }
 0x895   : > { %v1173_v16 = vpack.c.bf16 %v1172_v15, %v1172_v15 }
 0x897   : > { %2345 = vmatmul.mubr.msk.bf16.vlgmr.msra.gmra.mrb[0].mxu0 %vm998_vm3, %v1173_v16 }
 0x898   : > { %2355 = vmatpush3.bf16.msra.mxu0 %v1275_v17  ;;  %2356 = vmatprep.mubr.msk.bf16.mxu0 %vm3191_vm2, %v3190_v9 }
 0x899   : > { %2366 = vmatprep.subr.bf16.mxu0 %v3190_v9 }
 0x89f   : > { %2357 = vmatmul.mubr.msk.bf16.vlgmr.msra.gmra.mrb[4].mxu0 %vm998_vm3, %v1108_v19 }
 0x8a0   : > { %2367 = vmatpush3.bf16.msra.mxu0 %v1387_v20  ;;  %2368 = vmatprep.mubr.msk.bf16.mxu0 %vm3191_vm2, %v3190_v9 }
 0x8a1   : > { %2378 = vmatprep.subr.bf16.mxu0 %v3190_v9 }
 0x96a   : > { %v1216_v22 = vpop.f32.mrb[0].mxu0 }
 0x96b   : > { %v1222_v23 = vpack.c.bf16 %v1216_v22, %v1216_v22  ;;  %v2346_v24 = vpop.f32.mrb[1].mxu0 }
 0x96c   : > { %v1219_v25 = vpop.f32.mrb[2].mxu0 }
 0x96d   : > { %v2347_v28 = vpop.f32.mrb[3].mxu0  ;;  %2351 = vmatmul.mubr.msk.bf16.vlgmr.msra.gmra.mrb[16].mxu1 %vm998_vm3, %v1222_v23 }
 0x96e   : > { %2361 = vmatpush3.bf16.xpose.msra.mxu1 %v1325_v27  ;;  %2362 = vmatprep.mubr.msk.bf16.mxu1 %vm3191_vm2, %v3190_v9 }
 0x96f   : > { %2372 = vmatprep.subr.bf16.mxu1 %v3190_v9 }
 0x972   : > { %v1311_v29 = vpop.f32.mrb[4].mxu0 }
 0x973   : > { %v2358_v30 = vpop.f32.mrb[5].mxu0 }
 0x974   : > { %v1314_v32 = vpop.f32.mrb[6].mxu0 }
 0x975   : > { %v2359_v35 = vpop.f32.mrb[7].mxu0  ;;  %2363 = vmatmul.mubr.msk.bf16.vlgmr.msra.gmra.mrb[20].mxu1 %vm998_vm3, %v1318_v31 }
 0x976   : > { %2374 = vmatprep.mubr.msk.bf16.mxu1 %vm3191_vm2, %v3190_v9  ;;  %2373 = vmatpush3.bf16.msra.mxu1 %v1436_v61  ;;  %v2606_v61 = vld [vmem:[%s3900_s21 + $0x8] sm:$0xff]  }
 0x977   : > { %2384 = vmatprep.subr.bf16.mxu1 %v3190_v9 }
 0xa40   : > { %v1265_v36 = vpop.f32.mrb[16].mxu1 }
 0xa41   : > { %v4008_v37 = vadd.f32 %v1311_v29, %v1265_v36  ;;  %v2352_v38 = vpop.f32.mrb[17].mxu1 }
 0xa42   : > { %v1268_v39 = vpop.f32.mrb[18].mxu1  ;;  %v2252_v38 = vld [vmem:[%s721_s9] ss:$0 sm:$0xff]  ;;  %s1882_s9 = sshll.u32 %s3909_s17, 4  ;;  %s4095_s9 = int_to_ptr.vmem [resolvable:$true] %s1882_s9 }
 0xa43   : > { %v2353_v40 = vpop.f32.mrb[19].mxu1 }
 0xa48   : > { %v1361_v41 = vpop.f32.mrb[20].mxu1 }
 0xa49   : > { %v1367_v42 = vmul.f32 0.35355338, %v1361_v41  ;;  %v2364_v43 = vpop.f32.mrb[21].mxu1 }
 0xa4a   : > { %v1364_v44 = vpop.f32.mrb[22].mxu1 }
 0xa4b   : > { %v2365_v45 = vpop.f32.mrb[23].mxu1  ;;  %v1368_v46 = vsel %vm993_vm5, %v1367_v42, -1e+30 }
 0xa4c   : > { %v1369_v47 = vsel %vm998_vm3, %v1368_v46, -inf }
 0xa4d   : > { %1370 = vmax.xlane.f32.xlu1 %v1369_v47 }
 0xada   : > { %v1371_v48 = vpop.xlane.xlu1 %1370 }
 0xadb   : > { %v1372_v49 = vsub.f32 %v1368_v46, %v1371_v48 }
 0xadd   : > { %v1373_v50 = vmul.f32 1.442695, %v1372_v49  ;;  %v2603_v49 = vld [vmem:[%s762_s22] sm:$0xff]  }
 0xadf   : > { %2623 = vpow2.f32 %v1373_v50 }
 0xae9   : > { %v2624_v51 = vpop.eup %2623 }
 0xaea   : > { %v1375_v52 = vsel %vm998_vm3, %v2624_v51, 0.0 }
 0xaeb   : > { %1376 = vadd.xlane.f32.xlu0 %v1375_v52 }
 0xb01   : > { %1481 = vrot.lane.b32.xlu0 %v3942_v26, %s3200_s2 }
 0xb05   : > { %1479 = vrot.lane.b32.xlu0 %v3942_v26, %s3201_s0 }
 0xb78   : > { %v1377_v53 = vpop.xlane.xlu0 %1376 }
 0xb79   : > { %2625 = vrcp.f32 %v1377_v53 }
 0xb7c   : > { %v1482_v56 = vpop.permute.xlu0 %1481 }
 0xb7d   : > { %v1487_v58 = vsel %vm998_vm3, %v1482_v56, 0  ;;  %v2254_v56 = vld [vmem:[%s753_s26] ss:$0 sm:$0xff] }
 0xb80   : > { %v1480_v59 = vpop.permute.xlu0 %1479 }
 0xb83   : > { %v2626_v54 = vpop.eup %2625 }
 0xb84   : > { %v1379_v55 = vmul.f32 %v2626_v54, %v2624_v51  ;;  %v2253_v54 = vld [vmem:[%s745_s15] ss:$0 sm:$0xff] }
 0xb86   : > { %v1380_v57 = vpack.c.bf16 %v1379_v55, %v1379_v55 }
 0xb88   : > { %2369 = vmatmul.mubr.msk.bf16.vlgmr.msra.gmra.mrb[8].mxu0 %vm998_vm3, %v1380_v57 }
 0xb89   : > { %2379 = vmatpush3.bf16.xpose.msra.mxu0 %v1487_v58  ;;  %2380 = vmatprep.mubr.msk.bf16.mxu0 %vm3191_vm2, %v3190_v9 }
 0xb8a   : > { %2390 = vmatprep.subr.bf16.mxu0 %v3190_v9 }
 0xb90   : > { %2381 = vmatmul.mubr.msk.bf16.vlgmr.msra.gmra.mrb[12].mxu0 %vm998_vm3, %v1480_v59 }
 0xb91   : > { %2392 = vmatprep.mubr.msk.bf16.mxu0 %vm3191_vm2, %v3190_v9  ;;  %2391 = vmatpush3.bf16.msra.mxu0 %v1598_v18 }
 0xb92   : > { %2404 = vmatprep.subr.bf16.mxu0 %v3190_v9 }
 0xc5b   : > { %v1423_v62 = vpop.f32.mrb[8].mxu0 }
 0xc5c   : > { %v1429_v63 = vpack.c.bf16 %v1423_v62, %v1423_v62  ;;  %v2370_v0 = vpop.f32.mrb[9].mxu0  ;;  %v2607_v62 = vld [vmem:[%s3900_s21 + $0x10] sm:$0xff]  }
 0xc5d   : > { %v1426_v2 = vpop.f32.mrb[10].mxu0  ;;  %v2609_v0 = vld [vmem:[%s3900_s21 + $0x20] sm:$0xff]  }
 0xc5e   : > { %v2371_v3 = vpop.f32.mrb[11].mxu0  ;;  %2375 = vmatmul.mubr.msk.bf16.vlgmr.msra.gmra.mrb[24].mxu1 %vm998_vm3, %v1429_v63  ;;  %v2608_v63 = vld [vmem:[%s3900_s21 + $0x18] sm:$0xff]   ;;  %v2610_v2 = vld [vmem:[%s3900_s21 + $0x28] sm:$0xff]  }
 0xc5f   : > { %2386 = vmatprep.mubr.msk.bf16.mxu1 %vm3191_vm2, %v3190_v9  ;;  %v2611_v3 = vld [vmem:[%s3900_s21 + $0x30] sm:$0xff]  }
 0xc63   : > { %v1523_v4 = vpop.f32.mrb[12].mxu0 }
 0xc64   : > { %v1529_v5 = vmul.f32 0.35355338, %v1523_v4  ;;  %v2382_v6 = vpop.f32.mrb[13].mxu0  ;;  %v2612_v4 = vld [vmem:[%s3900_s21 + $0x38] sm:$0xff]   ;;  %s3027_s21 = scalar_lea.vmem %s4095_s9, 128 }
 0xc65   : > { %v1526_v7 = vpop.f32.mrb[14].mxu0  ;;  %p3028_p12 = scmp.ne.s32.totalorder %s4095_s9, %s3027_s21 }
 0xc66   : > { %v2383_v8 = vpop.f32.mrb[15].mxu0  ;;  %v1530_v10 = vsel %vm993_vm5, %v1529_v5, -1e+30  ;;  %v2255_v5 = vld [vmem:[%s770_s12] ss:$0 sm:$0xff] }
 0xc67   : > { %v1531_v11 = vsel %vm998_vm3, %v1530_v10, -inf  ;;  %p3029_p1 = pnand %p3028_p12, %p4288_p9 }
 0xc68   : > { %1532 = vmax.xlane.f32.xlu1 %v1531_v11 }
 0xc69   : > { %p3030_p13 = pneg %p3029_p1 }
 0xc79   : > { %1543 = vrot.lane.b32.xlu1 %v3942_v26, %s3202_s4 }
 0xcf5   : > { %v1533_v12 = vpop.xlane.xlu1 %1532 }
 0xcf6   : > { %v1534_v13 = vsub.f32 %v1530_v10, %v1533_v12 }
 0xcf8   : > { %v1535_v14 = vmul.f32 1.442695, %v1534_v13 }
 0xcf9   : > { %v1544_v15 = vpop.permute.xlu1 %1543 }
 0xcfa   : > { %2627 = vpow2.f32 %v1535_v14  ;;  %v1549_v16 = vsel %vm1064_vm4, %v1544_v15, 0 }
 0xcfb   : > { %2385 = vmatpush3.bf16.msra.mxu1 %v1549_v16 }
 0xcfc   : > { %2396 = vmatprep.subr.bf16.mxu1 %v3190_v9 }
 0xd04   : > { %v2628_v17 = vpop.eup %2627 }
 0xd05   : > { %v1537_v33 = vsel %vm998_vm3, %v2628_v17, 0.0 }
 0xd06   : > { %1538 = vadd.xlane.f32.xlu0 %v1537_v33  ;;  %v2260_v33 = vld [vmem:[%s787_s11] ss:$0 sm:$0xff]  ;;  %s3203_s11 = smov [#allocation23]  }
 0xd07   : > { %s3031_s3 = sshll.u32 %s3203_s11, 4  ;;  %s3032_s3 = int_to_ptr.vmem [resolvable:$false] %s3031_s3 }
 0xd08   : > { %s3033_s27 = scalar_lea.vmem %s3032_s3, 256  ;;  %p3034_p10 = scmp.lt.s32.totalorder %s4095_s9, %s3032_s3 }
 0xd09   : > { %p3035_p3 = scmp.lt.s32.totalorder %s3033_s27, %s3027_s21 }
 0xd0b   : > { %p3036_p2 = por %p3035_p3, %p3034_p10 }
 0xd0d   : > { %p3037_p5 = pnand %p3036_p2, %p3030_p13 }
 0xd31   : > { %v1472_v26 = vpop.f32.mrb[24].mxu1 }
 0xd32   : > { %v1478_v19 = vadd.f32 %v1472_v26, %v4008_v37  ;;  %v2376_v20 = vpop.f32.mrb[25].mxu1 }
 0xd33   : > { %v1475_v21 = vpop.f32.mrb[26].mxu1 }
 0xd34   : > { %v2377_v22 = vpop.f32.mrb[27].mxu1 }
 0xd93   : > { %v1539_v23 = vpop.xlane.xlu0 %1538 }
 0xd94   : > { %2629 = vrcp.f32 %v1539_v23 }
 0xd9e   : > { %v2630_v24 = vpop.eup %2629 }
 0xd9f   : > { %v1541_v25 = vmul.f32 %v2630_v24, %v2628_v17 }
 0xda1   : > { %v1542_v27 = vpack.c.bf16 %v1541_v25, %v1541_v25 }
 0xda3   : > { %2387 = vmatmul.mubr.msk.bf16.vlgmr.msra.gmra.mrb[28].mxu1 %vm998_vm3, %v1542_v27 }
 0xda4   : > { %2400 = vmatprep.mubr.msk.bf16.mxu1 %vm3191_vm2, %v3190_v9  ;;  %2397 = vmatpush3.bf16.msra.mxu1 %v2603_v49 }
 0xda5   : > { %2398 = vmatprep.subr.bf16.mxu1 %v3190_v9 }
 0xe76   : > { %v1585_v28 = vpop.f32.mrb[28].mxu1 }
 0xe77   : > { %v1591_v29 = vpack.c.bf16 %v1585_v28, %v1585_v28  ;;  %v2388_v30 = vpop.f32.mrb[29].mxu1 }
 0xe78   : > { %v1588_v31 = vpop.f32.mrb[30].mxu1 }
 0xe79   : > { %v2389_v32 = vpop.f32.mrb[31].mxu1  ;;  %2393 = vmatmul.mubr.msk.bf16.vlgmr.msra.gmra.mrb[16].mxu0 %vm998_vm3, %v1591_v29 }
 0xe7a   : > { %2420 = vmatprep.mubr.msk.bf16.mxu0 %vm3191_vm2, %v3190_v9  ;;  %2405 = vmatpush3.bf16.msra.mxu0 %v2605_v60 }
 0xe7b   : > { %2406 = vmatprep.subr.bf16.mxu0 %v3190_v9 }
 0xe7e   : > { %2407 = vmatpush3.bf16.msra.mxu0 %v2606_v61 }
 0xe7f   : > { %2408 = vmatprep.subr.bf16.mxu0 %v3190_v9 }
 0xe82   : > { %2409 = vmatpush3.bf16.msra.mxu0 %v2607_v62 }
 0xe83   : > { %2410 = vmatprep.subr.bf16.mxu0 %v3190_v9 }
 0xe86   : > { %2411 = vmatpush3.bf16.msra.mxu0 %v2608_v63 }
 0xe87   : > { %2412 = vmatprep.subr.bf16.mxu0 %v3190_v9 }
 0xe8a   : > { %2413 = vmatpush3.bf16.msra.mxu0 %v2609_v0 }
 0xe8b   : > { %2414 = vmatprep.subr.bf16.mxu0 %v3190_v9 }
 0xe8e   : > { %2415 = vmatpush3.bf16.msra.mxu0 %v2610_v2 }
 0xe8f   : > { %2416 = vmatprep.subr.bf16.mxu0 %v3190_v9 }
 0xe92   : > { %2417 = vmatpush3.bf16.msra.mxu0 %v2611_v3 }
 0xe93   : > { %2418 = vmatprep.subr.bf16.mxu0 %v3190_v9 }
 0xe96   : > { %2419 = vmatpush3.bf16.msra.mxu0 %v2612_v4 }
 0xf4c   : > { %v1634_v35 = vpop.f32.mrb[16].mxu0 }
 0xf4d   : > { %v1640_v36 = vadd.f32 %v1634_v35, %v1478_v19  ;;  %v2394_v37 = vpop.f32.mrb[17].mxu0 }
 0xf4e   : > { %v1637_v39 = vpop.f32.mrb[18].mxu0 }
 0xf4f   : > { %v1641_v40 = vadd.f32 %v1640_v36, %v3915_v1  ;;  %v2395_v41 = vpop.f32.mrb[19].mxu0  ;;  %v2604_v1 = vld [vmem:[%s762_s22 + $0x8] sm:$0xff]   ;;  %s4287_s22 = sld [smem:[#allocation58_spill]] }
 0xf50   : > { %2399 = vmatpush3.bf16.msra.mxu1 %v2604_v1 }
 0xf51   : > { %v4052_v42 = vadd.f32 %v2252_v38, %v1641_v40 }
 0xf53   : > { %v1652_v43 = vsel %vm893_vm1, %v4052_v42, 0.0 }
 0xf54   : > { %1653 = vadd.xlane.f32.xlu1 %v1652_v43 }
 0xf55   : > { %s4093_s12 = scalar_lea.hbm %s4287_s22, %s2270_s1 }
 0xfe1   : > { %v1654_v44 = vpop.xlane.xlu1 %1653 }
 0xfe2   : > { %v1655_v45 = vmul.f32 0.03125, %v1654_v44 }
 0xfe4   : > { %v1656_v46 = vsub.f32 %v4052_v42, %v1655_v45 }
 0xfe6   : > { %v1657_v47 = vmul.f32 %v1656_v46, %v1656_v46 }
 0xfe8   : > { %v1658_v48 = vsel %vm893_vm1, %v1657_v47, 0.0 }
 0xfe9   : > { %1659 = vadd.xlane.f32.xlu0 %v1658_v48 }
0x1076   : > { %v1660_v50 = vpop.xlane.xlu0 %1659 }
0x1077   : > { %v1661_v51 = vmul.f32 0.03125, %v1660_v50 }
0x1079   : > { %v1662_v52 = vadd.f32 1e-05, %v1661_v51 }
0x107b   : > { %2631 = vrsqrt.f32 %v1662_v52 }
0x1085   : > { %v2632_v53 = vpop.eup %2631 }
0x1086   : > { %v1664_v55 = vmul.f32 %v2632_v53, %v1656_v46 }
0x1088   : > { %v1671_v57 = vmul.f32 %v2253_v54, %v1664_v55 }
0x108a   : > { %v1678_v58 = vadd.f32 %v2254_v56, %v1671_v57 }
0x108c   : > { %v1679_v59 = vpack.c.bf16 %v1678_v58, %v1678_v58 }
0x108e   : > { %2401 = vmatmul.mubr.msk.bf16.vlgmr.msra.gmra.mrb[32].mxu1 %vm893_vm1, %v1679_v59 }
0x1161   : > { %v1740_v6 = vpop.f32.mrb[32].mxu1 }
0x1162   : > { %v1741_v7 = vadd.f32 %v2255_v5, %v1740_v6  ;;  %v2402_v8 = vpop.f32.mrb[33].mxu1 }
0x1163   : > { %v1743_v10 = vpop.f32.mrb[34].mxu1 }
0x1164   : > { %v2259_v11 = vmul.f32 -1.702, %v1741_v7  ;;  %v2403_v12 = vpop.f32.mrb[35].mxu1 }
0x1166   : > { %v1748_v13 = vmul.f32 1.442695, %v2259_v11 }
0x1168   : > { %2633 = vpow2.f32 %v1748_v13 }
0x1172   : > { %v2634_v14 = vpop.eup %2633 }
0x1173   : > { %v1750_v15 = vadd.f32 1.0, %v2634_v14 }
0x1175   : > { %2635 = vrcp.f32 %v1750_v15 }
0x117f   : > { %v2636_v9 = vpop.eup %2635 }
0x1180   : > { %v1753_v16 = vmul.f32 %v2636_v9, %v1741_v7 }
0x1182   : > { %v1754_v17 = vpack.c.bf16 %v1753_v16, %v1753_v16 }
0x1184   : > { %2421 = vmatmul.mubr.bf16.vlgmr.msra.gmra.mrb[20].mxu0 %v1754_v17 }
0x1257   : > { %v1860_v34 = vpop.f32.mrb[20].mxu0 }
0x1258   : > { %v1861_v18 = vadd.f32 %v2260_v33, %v1860_v34  ;;  %v2422_v26 = vpop.f32.mrb[21].mxu0 }
0x1259   : > { %v1863_v19 = vpop.f32.mrb[22].mxu0 }
0x125a   : > { %v1866_v20 = vadd.f32 %v1861_v18, %v4052_v42  ;;  %v2423_v21 = vpop.f32.mrb[23].mxu0 }
0x125c   : > { %1867 = vst.msk [vmem:[%s3909_s17] sm:$0xff] %vm893_vm1, %v1866_v20 }
0x125d   : > { %3040 = shalt.err (!%p3037_p5)
}
0x125e   : > { %s3041_s23 = scalar_lea.hbm %s4093_s12, 128  ;;  %s3045_s19 = scalar_lea.hbm %s4287_s22, 256 }
0x125f   : > { %p3042_p4 = scmp.ne.s32.totalorder %s4093_s12, %s3041_s23  ;;  %p3046_p6 = scmp.lt.u32.totalorder %s4093_s12, %s4287_s22 }
0x1260   : > { %p3047_p8 = scmp.lt.u32.totalorder %s3045_s19, %s3041_s23  ;;  %p3049_p12 = scmp.lt.u32.totalorder %s3041_s23, %s4093_s12 }
0x1261   : > { %p3043_p11 = pnand %p3042_p4, %p4288_p9 }
0x1262   : > { %p3048_p7 = por %p3047_p8, %p3046_p6 }
0x1263   : > { %p3044_p0 = pneg %p3043_p11 }
0x1264   : > { %p3050_p1 = por %p3049_p12, %p3048_p7 }
0x1266   : > { %p3051_p13 = pnand %p3050_p1, %p3044_p0 }
0x1268   : > { %3054 = shalt.err (!%p3051_p13)
}
0x1269   : > { %2450 = dma.vmem_to_hbm [thread:$0]  (%p4288_p9), %s4095_s9, 128, %s4093_s12, %s1869_s25  }
0x126a PF: > { %p2497_p10 = scmp.ge.s32.totalorder %s3173_s18, 2  ;;  %s1894_s10 = sand.u32 1, %s3145_s28  }
0x126b   : > { %p4289_p3 = scmp.ne.s32.totalorder %s4257_s14, 0  ;;  %s1895_s20 = scalar_lea.sflag [#allocation4], %s1894_s10 }
0x126d   : > { %p2493_p2 = pnand %p2497_p10, %p4289_p3 }
0x126f   : > { %3128 = dma.done.wait (!%p2493_p2), %s1895_s20, 128  }
0x1270   : > { %3130 = vsyncadd (!%p2493_p2), %s1895_s20, 4294967168  ;;  %s47_s18 = sadd.s32 1, %s3173_s18   ;;  %s4290_s25 = sld [smem:[#allocation33_spill]] }
0x1271   : > { %p44_p5 = scmp.ge.s32.totalorder %s47_s18, 6   ;;  %s4291_s26 = sld [smem:[#allocation34_spill]] }
0x1272   : > { %s4292_s27 = sld [smem:[#allocation43_spill]]  ;;  %s4293_s5 = sld [smem:[#allocation35_spill]] }
0x1273   : > { %s4294_s30 = sld [smem:[#allocation44_spill]]  ;;  %s4295_s14 = sld [smem:[#allocation38_spill]] }
0x1274   : > { %s4296_s15 = sld [smem:[#allocation39_spill]]  ;;  %s4297_s16 = sld [smem:[#allocation41_spill]] }
0x1275   : > { %s4298_s17 = sld [smem:[#allocation42_spill]]  ;;  %s4299_s28 = smov %s3149_s29 }
0x1276   :  { %46 = sbr.rel (!%p44_p5) target bundleno = 36 (0x24), region = 268 }
0x1278   : > { %s4300_s29 = smov %s4293_s5 }
0x127d   :  { %1900 = vsyncpa [#allocation3], 1 }
0x127e   :  { %1902 = vsyncpa [#allocation3 + $0x1], 1 }
0x127f   :  { %1903 = vsyncpa [#allocation6], 1 }
0x1280   :  { %1905 = vsyncpa [#allocation6 + $0x1], 1 }
0x1281   :  { %1906 = vsyncpa [#allocation9], 1 }
0x1282   :  { %1908 = vsyncpa [#allocation9 + $0x1], 1 }
0x1283   :  { %1909 = vsyncpa [#allocation12], 1 }
0x1284   :  { %1911 = vsyncpa [#allocation12 + $0x1], 1 }
0x1285   :  { %1912 = vsyncpa [#allocation15], 1 }
0x1286   :  { %1914 = vsyncpa [#allocation15 + $0x1], 1 }
0x1287   :  { %1915 = vsyncpa [#allocation18], 1 }
0x1288   :  { %1917 = vsyncpa [#allocation18 + $0x1], 1 }
0x1289   :  { %1918 = vsyncpa [#allocation21], 1 }
0x128a   :  { %1920 = vsyncpa [#allocation21 + $0x1], 1 }
0x128b   :  { %1921 = vsyncpa [#allocation4], 1 }
0x128c   :  { %1923 = vsyncpa [#allocation4 + $0x1], 1 }

</bundles_post_ra>
